<compile_context>
chip_gen: v6e
topology: v6e:2x2x1
jax: 0.10.0
libtpu: 0.0.40
codegen_flags: <defaults>
</compile_context>

<pallas_src>
import math

import jax
import jax.numpy as jnp
from jax.experimental import pallas as pl
from jax.experimental.pallas import tpu as pltpu

_NEG = -1e30        # Python float literal (NOT a jnp array -> no captured-constant error); finite stand-in
                    # for -inf keeps masked softmax NaN-free.
_LN_EPS = 1e-5      # torch.nn.LayerNorm default eps


# --------------------------------------------------------------------------- small helpers

def _round_up(x, m):
    return ((x + m - 1) // m) * m


def _layernorm(x, g, b):
    mu = jnp.mean(x, axis=-1, keepdims=True)
    xc = x - mu
    var = jnp.mean(xc * xc, axis=-1, keepdims=True)
    return xc * jax.lax.rsqrt(var + _LN_EPS) * g + b


def _first_layer(pre_f32, b_ref, g_ref, be_ref):
    """LayerNorm + ReLU on an already-matmul'ed first-layer pre-activation (f32)."""
    return jnp.maximum(_layernorm(pre_f32 + b_ref[...], g_ref[...], be_ref[...]), 0.0)


def _mlp_tail(x_f32, refs):
    """Remaining [Linear -> LayerNorm -> ReLU]* + Linear layers.  Weights bf16, bias/LN f32."""
    n_hidden = (len(refs) - 2) // 4
    x = x_f32
    for l in range(n_hidden):
        w, b, g, be = refs[4 * l: 4 * l + 4]
        h = jnp.dot(x.astype(jnp.bfloat16), w[...], preferred_element_type=jnp.float32) + b[...]
        x = jnp.maximum(_layernorm(h, g[...], be[...]), 0.0)
    w, b = refs[-2], refs[-1]
    return jnp.dot(x.astype(jnp.bfloat16), w[...], preferred_element_type=jnp.float32) + b[...]


def _masked_mode_logprob(logits, valid_f, n):
    """Deterministic Categorical over masked logits -> (action, onehot, log_prob): (tb,1)/(tb,n)/(tb,1)."""
    masked = jnp.where(valid_f > 0.5, logits, _NEG)
    row_max = jnp.max(masked, axis=-1, keepdims=True)
    col = jax.lax.broadcasted_iota(jnp.int32, masked.shape, 1)
    action = jnp.min(jnp.where(masked == row_max, col, n), axis=-1, keepdims=True)  # first argmax
    onehot = (col == action).astype(jnp.float32)
    lse = row_max + jnp.log(jnp.sum(jnp.exp(masked - row_max), axis=-1, keepdims=True))
    chosen = jnp.sum(onehot * masked, axis=-1, keepdims=True)
    return action, onehot, chosen - lse


# --------------------------------------------------------------------------- parameters

def _init_mlp(key, in_dim, hidden_dims, out_dim):
    """Weights (in,out), bias/gamma/beta as (1,h) rows: [W,b,g,beta]*n_hidden + [Wout,bout]."""
    prm = []
    dims = [in_dim] + list(hidden_dims)
    for i in range(len(hidden_dims)):
        key, k = jax.random.split(key)
        prm.append(jax.random.normal(k, (dims[i], dims[i + 1]), jnp.float32)
                   * (1.0 / math.sqrt(dims[i])))
        prm.append(jnp.zeros((1, dims[i + 1]), jnp.float32))   # bias
        prm.append(jnp.ones((1, dims[i + 1]), jnp.float32))    # LayerNorm gamma
        prm.append(jnp.zeros((1, dims[i + 1]), jnp.float32))   # LayerNorm beta
    key, k = jax.random.split(key)
    prm.append(jax.random.normal(k, (dims[-1], out_dim), jnp.float32)
               * (1.0 / math.sqrt(dims[-1])))
    prm.append(jnp.zeros((1, out_dim), jnp.float32))
    return prm


def init_policy_params(key, *, features_dim=128, rule_dim=5, max_positions=2,
                       rule_hidden=(128, 128), pos_hidden=(128, 128),
                       value_hidden=(256, 128, 64)):
    k_rule, k_pos, k_val = jax.random.split(key, 3)
    rule = _init_mlp(k_rule, features_dim, rule_hidden, rule_dim)
    pos_full = _init_mlp(k_pos, features_dim + rule_dim, pos_hidden, max_positions)
    w1 = pos_full[0]
    # split first pos-head weight so the kernel avoids a concat: [enc, onehot]@W = enc@W[:D] + onehot@W[D:]
    pos = [w1[:features_dim, :], w1[features_dim:, :]] + pos_full[1:]
    value = _init_mlp(k_val, features_dim, value_hidden, 1)
    return {"rule": rule, "pos": pos, "value": value,
            "rule_dim": rule_dim, "max_positions": max_positions,
            "features_dim": features_dim}


# --------------------------------------------------------------------------- forward passes

def custom_features_extractor_forward(obs_dict, *, features_dim=128):
    # Pure identity: no pallas_call / HBM round trip.
    return obs_dict["observation"]


def _pick_tile(B):
    """Batch tile: multiple of 128 for large B, keep >=2 (ideally >=4) grid steps for v7x's 2 TCs."""
    if B <= 128:
        return _round_up(B, 8)                     # single step, full extent
    t = _round_up(-(-B // 4), 128)                 # aim for ~4 grid steps
    return max(128, min(t, 1024))                  # cap keeps f32 intermediates inside v5e scoped VMEM


def hierarchical_policy_forward(params, obs_dict, *, deterministic=True):
    """Pallas-fused HierarchicalMaskablePolicy.forward -> (flat_action, value, log_prob)."""
    if not deterministic:
        # TODO(synk): stochastic sampling (deterministic=False) needs in-kernel Gumbel noise via pltpu.prng;
        # only the deterministic (Categorical.mode) path is implemented.
        raise NotImplementedError("only deterministic=True is supported")

    obs = jnp.asarray(obs_dict["observation"], jnp.float32)
    action_mask = jnp.asarray(obs_dict["action_mask"])
    R = int(params["rule_dim"])
    P = int(params["max_positions"])
    A = R * P
    B, D = obs.shape

    rule, pos, val = params["rule"], params["pos"], params["value"]
    h_r = rule[0].shape[1]
    h_p = pos[0].shape[1]

    # ---- bf16 weight packing; the three enc-consuming first-layer weights are fused into one wide matmul
    def _pack_tail(prm):
        out = []
        n_hidden = (len(prm) - 2) // 4
        for l in range(n_hidden):
            w, b, g, be = prm[4 * l: 4 * l + 4]
            out += [w.astype(jnp.bfloat16), b, g, be]
        out += [prm[-2].astype(jnp.bfloat16), prm[-1]]
        return out

    w_cat = jnp.concatenate([rule[0], pos[0], val[0]], axis=1).astype(jnp.bfloat16)   # (D, h_r+h_p+h_v)
    rule_first = list(rule[1:4])                     # b, gamma, beta (f32)
    rule_tail = _pack_tail(rule[4:])
    w_pr = pos[1].astype(jnp.bfloat16)               # (R, h_p) one-hot part of pos first layer
    pos_first = list(pos[2:5])
    pos_tail = _pack_tail(pos[5:])
    val_first = list(val[1:4])
    val_tail = _pack_tail(val[4:])
    n_rt, n_pt, n_vt = len(rule_tail), len(pos_tail), len(val_tail)

    # ---- constant selection matrices for the in-kernel mask gather / any-reduction (tiny, VMEM-resident)
    erule = (jnp.arange(R)[:, None] == (jnp.arange(A)[None, :] // P)).astype(jnp.float32)   # (R, A)
    erule_t = erule.T                                                                        # (A, R)
    epos = ((jnp.arange(A)[:, None] % P) == jnp.arange(P)[None, :]).astype(jnp.float32)      # (A, P)

    # ---- batch tiling + padding; obs as bf16, mask as int8 (narrow DMA streams)
    tile_b = _pick_tile(B)
    Bp = _round_up(B, tile_b)
    pad = Bp - B
    obs_bf = obs.astype(jnp.bfloat16)
    mask_i8 = action_mask.reshape(B, A).astype(jnp.int8)
    if pad:
        obs_bf = jnp.pad(obs_bf, ((0, pad), (0, 0)))
        mask_i8 = jnp.pad(mask_i8, ((0, pad), (0, 0)))   # all-invalid rows stay NaN-free (finite _NEG)

    def kernel(*refs):
        obs_ref, mask_ref, erule_ref, erule_t_ref, epos_ref, wcat_ref = refs[:6]
        i = 6
        rf = refs[i:i + 3]; i += 3
        rt = refs[i:i + n_rt]; i += n_rt
        wpr_ref = refs[i]; i += 1
        pf = refs[i:i + 3]; i += 3
        pt = refs[i:i + n_pt]; i += n_pt
        vf = refs[i:i + 3]; i += 3
        vt = refs[i:i + n_vt]; i += n_vt
        out_ref = refs[i]

        enc = obs_ref[...]                                   # bf16 (tb, D) -- identity features extractor
        mask_f = mask_ref[...].astype(jnp.float32)           # (tb, A)
        tb = enc.shape[0]

        # fused first layer of the three enc-consuming heads: one wide MXU pass, lane-aligned slices
        hfirst = jnp.dot(enc, wcat_ref[...], preferred_element_type=jnp.float32)   # (tb, h_r+h_p+h_v)
        h_rule = _first_layer(hfirst[:, :h_r], *rf)
        h_val = _first_layer(hfirst[:, h_r + h_p:], *vf)

        # rule head + masked mode + log-prob (rule_mask computed in-kernel: mask @ erule^T > 0 == any)
        rule_logits = _mlp_tail(h_rule, rt)                                        # (tb, R)
        rule_mask = jnp.dot(mask_f, erule_t_ref[...], preferred_element_type=jnp.float32)
        rule_action, onehot_rule, logp_rule = _masked_mode_logprob(rule_logits, rule_mask, R)

        # pos_mask[b, :] = mask[b, rule_action[b], :] via two tiny matmuls (no data-dependent indexing)
        onehot_exp = jnp.dot(onehot_rule, erule_ref[...], preferred_element_type=jnp.float32)   # (tb, A)
        pos_mask = jnp.dot(mask_f * onehot_exp, epos_ref[...],
                           preferred_element_type=jnp.float32)                                  # (tb, P)

        # pos head: enc part already in hfirst; add the one-hot part
        pre_pos = hfirst[:, h_r:h_r + h_p] + jnp.dot(
            onehot_rule.astype(jnp.bfloat16), wpr_ref[...], preferred_element_type=jnp.float32)
        h_pos = _first_layer(pre_pos, *pf)
        pos_logits = _mlp_tail(h_pos, pt)                                          # (tb, P)
        pos_action, _, logp_pos = _masked_mode_logprob(pos_logits, pos_mask, P)

        # value head
        value = _mlp_tail(h_val, vt)                                               # (tb, 1)

        # lane-dense packed output slab: rows 0/1/2 = action / value / log_prob, rows 3..7 zero
        act_f = (rule_action * P + pos_action).astype(jnp.float32)
        packed = jnp.concatenate(
            [act_f, value, logp_rule + logp_pos, jnp.zeros((tb, 5), jnp.float32)], axis=1)      # (tb, 8)
        out_ref[...] = packed.T                                                    # (8, tb)

    def tiled(cols):
        return pl.BlockSpec((tile_b, cols), lambda i: (i, 0))

    def replicated(arr):
        return pl.BlockSpec(arr.shape, lambda i: (0, 0))

    weight_args = ([w_cat] + rule_first + rule_tail + [w_pr] + pos_first + pos_tail
                   + val_first + val_tail)
    in_specs = ([tiled(D), tiled(A), replicated(erule), replicated(erule_t), replicated(epos)]
                + [replicated(w) for w in weight_args])
    out_specs = pl.BlockSpec((8, tile_b), lambda i: (0, i))
    out_shape = jax.ShapeDtypeStruct((8, Bp), jnp.float32)

    packed = pl.pallas_call(
        kernel,
        grid=(Bp // tile_b,),
        in_specs=in_specs,
        out_specs=out_specs,
        out_shape=out_shape,
        compiler_params=pltpu.CompilerParams(dimension_semantics=("parallel",)),
    )(obs_bf, mask_i8, erule, erule_t, epos, *weight_args)

    flat_action = packed[0, :B].astype(jnp.int32)
    value = packed[1, :B]
    log_prob = packed[2, :B]
    return flat_action, value, log_prob


# --------------------------------------------------------------------------- pure-JAX reference

def _mlp_ref(x, prm):
    n_hidden = (len(prm) - 2) // 4
    for l in range(n_hidden):
        w, b, g, be = prm[4 * l: 4 * l + 4]
        x = x @ w + b
        mu = x.mean(-1, keepdims=True)
        xc = x - mu
        var = (xc * xc).mean(-1, keepdims=True)
        x = jnp.maximum(xc * jax.lax.rsqrt(var + _LN_EPS) * g + be, 0.0)
    return x @ prm[-2] + prm[-1]


def reference_forward(params, obs_dict):
    obs = jnp.asarray(obs_dict["observation"], jnp.float32)
    mask = jnp.asarray(obs_dict["action_mask"]).astype(bool)
    R, P = params["rule_dim"], params["max_positions"]
    B = obs.shape[0]
    enc = obs
    mask3 = mask.reshape(B, R, P)
    rule_mask = jnp.any(mask3, axis=2)

    rule_logits = _mlp_ref(enc, params["rule"])
    masked_rule = jnp.where(rule_mask, rule_logits, _NEG)
    rule_action = jnp.argmax(masked_rule, axis=1)
    onehot = jax.nn.one_hot(rule_action, R, dtype=jnp.float32)
    logp_rule = jnp.take_along_axis(jax.nn.log_softmax(masked_rule, axis=-1),
                                    rule_action[:, None], axis=1)[:, 0]

    pos_mask = jnp.take_along_axis(mask3, rule_action[:, None, None], axis=1)[:, 0, :]
    p = params["pos"]
    h = enc @ p[0] + onehot @ p[1] + p[2]
    mu = h.mean(-1, keepdims=True)
    xc = h - mu
    var = (xc * xc).mean(-1, keepdims=True)
    h = jnp.maximum(xc * jax.lax.rsqrt(var + _LN_EPS) * p[3] + p[4], 0.0)
    pos_logits = _mlp_ref(h, p[5:])
    masked_pos = jnp.where(pos_mask, pos_logits, _NEG)
    pos_action = jnp.argmax(masked_pos, axis=1)
    logp_pos = jnp.take_along_axis(jax.nn.log_softmax(masked_pos, axis=-1),
                                   pos_action[:, None], axis=1)[:, 0]

    flat_action = rule_action * P + pos_action
    value = _mlp_ref(enc, params["value"])[:, 0]
    return flat_action, value, logp_rule + logp_pos


# --------------------------------------------------------------------------- demo / self-test

if __name__ == "__main__":
    key = jax.random.PRNGKey(0)
    B, D, R, P = 8, 128, 5, 2
    k_obs, k_mask, k_params = jax.random.split(key, 3)

    obs = jax.random.normal(k_obs, (B, D), dtype=jnp.float32)
    mask = jax.random.bernoulli(k_mask, 0.6, (B, R * P))
    mask = mask.at[:, 0].set(True)                      # guarantee >= 1 legal action per row
    obs_dict = {"observation": obs, "action_mask": mask}

    params = init_policy_params(k_params, features_dim=D, rule_dim=R, max_positions=P)

    act, value, logp = hierarchical_policy_forward(params, obs_dict, deterministic=True)
    jax.block_until_ready((act, value, logp))

    act_r, value_r, logp_r = reference_forward(params, obs_dict)

    assert act.shape == (B,) and value.shape == (B,) and logp.shape == (B,)
    assert bool(jnp.all(act == act_r))
    assert bool(jnp.all(mask[jnp.arange(B), act]))       # chosen flat actions are legal under the mask
    assert bool(jnp.allclose(value, value_r, rtol=1e-2, atol=1e-2))
    assert bool(jnp.allclose(logp, logp_r, rtol=1e-2, atol=1e-2))

    print("KERNEL_OK")
</pallas_src>

<mosaic_0001>
module attributes {stable_mosaic.version = 11 : i64} {
  func.func @kernel(%arg0: i32, %arg1: memref<8x128xbf16, #tpu.memory_space<vmem>>, %arg2: memref<8x10xi8, #tpu.memory_space<vmem>>, %arg3: memref<5x10xf32, #tpu.memory_space<vmem>>, %arg4: memref<10x5xf32, #tpu.memory_space<vmem>>, %arg5: memref<10x2xf32, #tpu.memory_space<vmem>>, %arg6: memref<128x512xbf16, #tpu.memory_space<vmem>>, %arg7: memref<1x128xf32, #tpu.memory_space<vmem>>, %arg8: memref<1x128xf32, #tpu.memory_space<vmem>>, %arg9: memref<1x128xf32, #tpu.memory_space<vmem>>, %arg10: memref<128x128xbf16, #tpu.memory_space<vmem>>, %arg11: memref<1x128xf32, #tpu.memory_space<vmem>>, %arg12: memref<1x128xf32, #tpu.memory_space<vmem>>, %arg13: memref<1x128xf32, #tpu.memory_space<vmem>>, %arg14: memref<128x5xbf16, #tpu.memory_space<vmem>>, %arg15: memref<1x5xf32, #tpu.memory_space<vmem>>, %arg16: memref<5x128xbf16, #tpu.memory_space<vmem>>, %arg17: memref<1x128xf32, #tpu.memory_space<vmem>>, %arg18: memref<1x128xf32, #tpu.memory_space<vmem>>, %arg19: memref<1x128xf32, #tpu.memory_space<vmem>>, %arg20: memref<128x128xbf16, #tpu.memory_space<vmem>>, %arg21: memref<1x128xf32, #tpu.memory_space<vmem>>, %arg22: memref<1x128xf32, #tpu.memory_space<vmem>>, %arg23: memref<1x128xf32, #tpu.memory_space<vmem>>, %arg24: memref<128x2xbf16, #tpu.memory_space<vmem>>, %arg25: memref<1x2xf32, #tpu.memory_space<vmem>>, %arg26: memref<1x256xf32, #tpu.memory_space<vmem>>, %arg27: memref<1x256xf32, #tpu.memory_space<vmem>>, %arg28: memref<1x256xf32, #tpu.memory_space<vmem>>, %arg29: memref<256x128xbf16, #tpu.memory_space<vmem>>, %arg30: memref<1x128xf32, #tpu.memory_space<vmem>>, %arg31: memref<1x128xf32, #tpu.memory_space<vmem>>, %arg32: memref<1x128xf32, #tpu.memory_space<vmem>>, %arg33: memref<128x64xbf16, #tpu.memory_space<vmem>>, %arg34: memref<1x64xf32, #tpu.memory_space<vmem>>, %arg35: memref<1x64xf32, #tpu.memory_space<vmem>>, %arg36: memref<1x64xf32, #tpu.memory_space<vmem>>, %arg37: memref<64x1xbf16, #tpu.memory_space<vmem>>, %arg38: memref<1x1xf32, #tpu.memory_space<vmem>>, %arg39: memref<8x8xf32, #tpu.memory_space<vmem>>) attributes {dimension_semantics = [#tpu.dimension_semantics<parallel>], iteration_bounds = array<i64: 1>, scalar_prefetch = 0 : i64, scratch_operands = 0 : i64, tpu.core_type = #tpu.core_type<tc>, window_params = [{transform_indices = @transform_0, window_bounds = array<i64: 8, 128>}, {transform_indices = @transform_1, window_bounds = array<i64: 8, 10>}, {pipeline_mode = #tpu.pipeline_mode<synchronous>, transform_indices = @transform_2, window_bounds = array<i64: 5, 10>}, {pipeline_mode = #tpu.pipeline_mode<synchronous>, transform_indices = @transform_3, window_bounds = array<i64: 10, 5>}, {pipeline_mode = #tpu.pipeline_mode<synchronous>, transform_indices = @transform_4, window_bounds = array<i64: 10, 2>}, {pipeline_mode = #tpu.pipeline_mode<synchronous>, transform_indices = @transform_5, window_bounds = array<i64: 128, 512>}, {pipeline_mode = #tpu.pipeline_mode<synchronous>, transform_indices = @transform_6, window_bounds = array<i64: 1, 128>}, {pipeline_mode = #tpu.pipeline_mode<synchronous>, transform_indices = @transform_7, window_bounds = array<i64: 1, 128>}, {pipeline_mode = #tpu.pipeline_mode<synchronous>, transform_indices = @transform_8, window_bounds = array<i64: 1, 128>}, {pipeline_mode = #tpu.pipeline_mode<synchronous>, transform_indices = @transform_9, window_bounds = array<i64: 128, 128>}, {pipeline_mode = #tpu.pipeline_mode<synchronous>, transform_indices = @transform_10, window_bounds = array<i64: 1, 128>}, {pipeline_mode = #tpu.pipeline_mode<synchronous>, transform_indices = @transform_11, window_bounds = array<i64: 1, 128>}, {pipeline_mode = #tpu.pipeline_mode<synchronous>, transform_indices = @transform_12, window_bounds = array<i64: 1, 128>}, {pipeline_mode = #tpu.pipeline_mode<synchronous>, transform_indices = @transform_13, window_bounds = array<i64: 128, 5>}, {pipeline_mode = #tpu.pipeline_mode<synchronous>, transform_indices = @transform_14, window_bounds = array<i64: 1, 5>}, {pipeline_mode = #tpu.pipeline_mode<synchronous>, transform_indices = @transform_15, window_bounds = array<i64: 5, 128>}, {pipeline_mode = #tpu.pipeline_mode<synchronous>, transform_indices = @transform_16, window_bounds = array<i64: 1, 128>}, {pipeline_mode = #tpu.pipeline_mode<synchronous>, transform_indices = @transform_17, window_bounds = array<i64: 1, 128>}, {pipeline_mode = #tpu.pipeline_mode<synchronous>, transform_indices = @transform_18, window_bounds = array<i64: 1, 128>}, {pipeline_mode = #tpu.pipeline_mode<synchronous>, transform_indices = @transform_19, window_bounds = array<i64: 128, 128>}, {pipeline_mode = #tpu.pipeline_mode<synchronous>, transform_indices = @transform_20, window_bounds = array<i64: 1, 128>}, {pipeline_mode = #tpu.pipeline_mode<synchronous>, transform_indices = @transform_21, window_bounds = array<i64: 1, 128>}, {pipeline_mode = #tpu.pipeline_mode<synchronous>, transform_indices = @transform_22, window_bounds = array<i64: 1, 128>}, {pipeline_mode = #tpu.pipeline_mode<synchronous>, transform_indices = @transform_23, window_bounds = array<i64: 128, 2>}, {pipeline_mode = #tpu.pipeline_mode<synchronous>, transform_indices = @transform_24, window_bounds = array<i64: 1, 2>}, {pipeline_mode = #tpu.pipeline_mode<synchronous>, transform_indices = @transform_25, window_bounds = array<i64: 1, 256>}, {pipeline_mode = #tpu.pipeline_mode<synchronous>, transform_indices = @transform_26, window_bounds = array<i64: 1, 256>}, {pipeline_mode = #tpu.pipeline_mode<synchronous>, transform_indices = @transform_27, window_bounds = array<i64: 1, 256>}, {pipeline_mode = #tpu.pipeline_mode<synchronous>, transform_indices = @transform_28, window_bounds = array<i64: 256, 128>}, {pipeline_mode = #tpu.pipeline_mode<synchronous>, transform_indices = @transform_29, window_bounds = array<i64: 1, 128>}, {pipeline_mode = #tpu.pipeline_mode<synchronous>, transform_indices = @transform_30, window_bounds = array<i64: 1, 128>}, {pipeline_mode = #tpu.pipeline_mode<synchronous>, transform_indices = @transform_31, window_bounds = array<i64: 1, 128>}, {pipeline_mode = #tpu.pipeline_mode<synchronous>, transform_indices = @transform_32, window_bounds = array<i64: 128, 64>}, {pipeline_mode = #tpu.pipeline_mode<synchronous>, transform_indices = @transform_33, window_bounds = array<i64: 1, 64>}, {pipeline_mode = #tpu.pipeline_mode<synchronous>, transform_indices = @transform_34, window_bounds = array<i64: 1, 64>}, {pipeline_mode = #tpu.pipeline_mode<synchronous>, transform_indices = @transform_35, window_bounds = array<i64: 1, 64>}, {pipeline_mode = #tpu.pipeline_mode<synchronous>, transform_indices = @transform_36, window_bounds = array<i64: 64, 1>}, {pipeline_mode = #tpu.pipeline_mode<synchronous>, transform_indices = @transform_37, window_bounds = array<i64: 1, 1>}, {transform_indices = @transform_38, window_bounds = array<i64: 8, 8>}]} {
    %c0 = arith.constant 0 : index
    %c0_0 = arith.constant 0 : index
    %0 = vector.load %arg1[%c0, %c0_0] : memref<8x128xbf16, #tpu.memory_space<vmem>>, vector<8x128xbf16>
    %c0_1 = arith.constant 0 : index
    %c0_2 = arith.constant 0 : index
    %1 = vector.load %arg2[%c0_1, %c0_2] : memref<8x10xi8, #tpu.memory_space<vmem>>, vector<8x10xi8>
    %2 = arith.sitofp %1 : vector<8x10xi8> to vector<8x10xf32>
    %c0_3 = arith.constant 0 : index
    %c0_4 = arith.constant 0 : index
    %3 = vector.load %arg6[%c0_3, %c0_4] : memref<128x512xbf16, #tpu.memory_space<vmem>>, vector<128x512xbf16>
    %cst = arith.constant dense<0.000000e+00> : vector<8x512xf32>
    %4 = tpu.matmul %0, %3, %cst {dimension_numbers = #tpu.dot_dimension_numbers<[1], [0], [0], [1], [0, 0, 1, 1], [], []>} : vector<8x128xbf16>, vector<128x512xbf16>, vector<8x512xf32> -> vector<8x512xf32>
    %5 = vector.extract_strided_slice %4 {offsets = [0, 0], sizes = [8, 128], strides = [1, 1]} : vector<8x512xf32> to vector<8x128xf32>
    %c0_5 = arith.constant 0 : index
    %c0_6 = arith.constant 0 : index
    %6 = vector.load %arg7[%c0_5, %c0_6] : memref<1x128xf32, #tpu.memory_space<vmem>>, vector<1x128xf32>
    %7 = vector.broadcast %6 : vector<1x128xf32> to vector<8x128xf32>
    %8 = arith.addf %5, %7 : vector<8x128xf32>
    %c0_7 = arith.constant 0 : index
    %c0_8 = arith.constant 0 : index
    %9 = vector.load %arg8[%c0_7, %c0_8] : memref<1x128xf32, #tpu.memory_space<vmem>>, vector<1x128xf32>
    %c0_9 = arith.constant 0 : index
    %c0_10 = arith.constant 0 : index
    %10 = vector.load %arg9[%c0_9, %c0_10] : memref<1x128xf32, #tpu.memory_space<vmem>>, vector<1x128xf32>
    %cst_11 = arith.constant dense<0.000000e+00> : vector<8xf32>
    %11 = vector.multi_reduction <add>, %8, %cst_11 [1] : vector<8x128xf32> to vector<8xf32>
    %12 = vector.shape_cast %11 : vector<8xf32> to vector<8x1xf32>
    %cst_12 = arith.constant 1.280000e+02 : f32
    %13 = vector.broadcast %cst_12 : f32 to vector<8x1xf32>
    %14 = arith.divf %12, %13 : vector<8x1xf32>
    %15 = vector.broadcast %14 : vector<8x1xf32> to vector<8x128xf32>
    %16 = arith.subf %8, %15 : vector<8x128xf32>
    %17 = arith.mulf %16, %16 : vector<8x128xf32>
    %cst_13 = arith.constant dense<0.000000e+00> : vector<8xf32>
    %18 = vector.multi_reduction <add>, %17, %cst_13 [1] : vector<8x128xf32> to vector<8xf32>
    %19 = vector.shape_cast %18 : vector<8xf32> to vector<8x1xf32>
    %cst_14 = arith.constant 1.280000e+02 : f32
    %20 = vector.broadcast %cst_14 : f32 to vector<8x1xf32>
    %21 = arith.divf %19, %20 : vector<8x1xf32>
    %cst_15 = arith.constant 9.99999974E-6 : f32
    %22 = vector.broadcast %cst_15 : f32 to vector<8x1xf32>
    %23 = arith.addf %21, %22 : vector<8x1xf32>
    %24 = math.rsqrt %23 : vector<8x1xf32>
    %25 = vector.broadcast %24 : vector<8x1xf32> to vector<8x128xf32>
    %26 = arith.mulf %16, %25 : vector<8x128xf32>
    %27 = vector.broadcast %9 : vector<1x128xf32> to vector<8x128xf32>
    %28 = arith.mulf %26, %27 : vector<8x128xf32>
    %29 = vector.broadcast %10 : vector<1x128xf32> to vector<8x128xf32>
    %30 = arith.addf %28, %29 : vector<8x128xf32>
    %cst_16 = arith.constant 0.000000e+00 : f32
    %31 = vector.broadcast %cst_16 : f32 to vector<8x128xf32>
    %32 = arith.maximumf %30, %31 : vector<8x128xf32>
    %33 = vector.extract_strided_slice %4 {offsets = [0, 256], sizes = [8, 256], strides = [1, 1]} : vector<8x512xf32> to vector<8x256xf32>
    %c0_17 = arith.constant 0 : index
    %c0_18 = arith.constant 0 : index
    %34 = vector.load %arg26[%c0_17, %c0_18] : memref<1x256xf32, #tpu.memory_space<vmem>>, vector<1x256xf32>
    %35 = vector.broadcast %34 : vector<1x256xf32> to vector<8x256xf32>
    %36 = arith.addf %33, %35 : vector<8x256xf32>
    %c0_19 = arith.constant 0 : index
    %c0_20 = arith.constant 0 : index
    %37 = vector.load %arg27[%c0_19, %c0_20] : memref<1x256xf32, #tpu.memory_space<vmem>>, vector<1x256xf32>
    %c0_21 = arith.constant 0 : index
    %c0_22 = arith.constant 0 : index
    %38 = vector.load %arg28[%c0_21, %c0_22] : memref<1x256xf32, #tpu.memory_space<vmem>>, vector<1x256xf32>
    %cst_23 = arith.constant dense<0.000000e+00> : vector<8xf32>
    %39 = vector.multi_reduction <add>, %36, %cst_23 [1] : vector<8x256xf32> to vector<8xf32>
    %40 = vector.shape_cast %39 : vector<8xf32> to vector<8x1xf32>
    %cst_24 = arith.constant 2.560000e+02 : f32
    %41 = vector.broadcast %cst_24 : f32 to vector<8x1xf32>
    %42 = arith.divf %40, %41 : vector<8x1xf32>
    %43 = vector.broadcast %42 : vector<8x1xf32> to vector<8x256xf32>
    %44 = arith.subf %36, %43 : vector<8x256xf32>
    %45 = arith.mulf %44, %44 : vector<8x256xf32>
    %cst_25 = arith.constant dense<0.000000e+00> : vector<8xf32>
    %46 = vector.multi_reduction <add>, %45, %cst_25 [1] : vector<8x256xf32> to vector<8xf32>
    %47 = vector.shape_cast %46 : vector<8xf32> to vector<8x1xf32>
    %cst_26 = arith.constant 2.560000e+02 : f32
    %48 = vector.broadcast %cst_26 : f32 to vector<8x1xf32>
    %49 = arith.divf %47, %48 : vector<8x1xf32>
    %cst_27 = arith.constant 9.99999974E-6 : f32
    %50 = vector.broadcast %cst_27 : f32 to vector<8x1xf32>
    %51 = arith.addf %49, %50 : vector<8x1xf32>
    %52 = math.rsqrt %51 : vector<8x1xf32>
    %53 = vector.broadcast %52 : vector<8x1xf32> to vector<8x256xf32>
    %54 = arith.mulf %44, %53 : vector<8x256xf32>
    %55 = vector.broadcast %37 : vector<1x256xf32> to vector<8x256xf32>
    %56 = arith.mulf %54, %55 : vector<8x256xf32>
    %57 = vector.broadcast %38 : vector<1x256xf32> to vector<8x256xf32>
    %58 = arith.addf %56, %57 : vector<8x256xf32>
    %cst_28 = arith.constant 0.000000e+00 : f32
    %59 = vector.broadcast %cst_28 : f32 to vector<8x256xf32>
    %60 = arith.maximumf %58, %59 : vector<8x256xf32>
    %61 = arith.truncf %32 : vector<8x128xf32> to vector<8x128xbf16>
    %c0_29 = arith.constant 0 : index
    %c0_30 = arith.constant 0 : index
    %62 = vector.load %arg10[%c0_29, %c0_30] : memref<128x128xbf16, #tpu.memory_space<vmem>>, vector<128x128xbf16>
    %cst_31 = arith.constant dense<0.000000e+00> : vector<8x128xf32>
    %63 = tpu.matmul %61, %62, %cst_31 {dimension_numbers = #tpu.dot_dimension_numbers<[1], [0], [0], [1], [0, 0, 1, 1], [], []>} : vector<8x128xbf16>, vector<128x128xbf16>, vector<8x128xf32> -> vector<8x128xf32>
    %c0_32 = arith.constant 0 : index
    %c0_33 = arith.constant 0 : index
    %64 = vector.load %arg11[%c0_32, %c0_33] : memref<1x128xf32, #tpu.memory_space<vmem>>, vector<1x128xf32>
    %65 = vector.broadcast %64 : vector<1x128xf32> to vector<8x128xf32>
    %66 = arith.addf %63, %65 : vector<8x128xf32>
    %c0_34 = arith.constant 0 : index
    %c0_35 = arith.constant 0 : index
    %67 = vector.load %arg12[%c0_34, %c0_35] : memref<1x128xf32, #tpu.memory_space<vmem>>, vector<1x128xf32>
    %c0_36 = arith.constant 0 : index
    %c0_37 = arith.constant 0 : index
    %68 = vector.load %arg13[%c0_36, %c0_37] : memref<1x128xf32, #tpu.memory_space<vmem>>, vector<1x128xf32>
    %cst_38 = arith.constant dense<0.000000e+00> : vector<8xf32>
    %69 = vector.multi_reduction <add>, %66, %cst_38 [1] : vector<8x128xf32> to vector<8xf32>
    %70 = vector.shape_cast %69 : vector<8xf32> to vector<8x1xf32>
    %cst_39 = arith.constant 1.280000e+02 : f32
    %71 = vector.broadcast %cst_39 : f32 to vector<8x1xf32>
    %72 = arith.divf %70, %71 : vector<8x1xf32>
    %73 = vector.broadcast %72 : vector<8x1xf32> to vector<8x128xf32>
    %74 = arith.subf %66, %73 : vector<8x128xf32>
    %75 = arith.mulf %74, %74 : vector<8x128xf32>
    %cst_40 = arith.constant dense<0.000000e+00> : vector<8xf32>
    %76 = vector.multi_reduction <add>, %75, %cst_40 [1] : vector<8x128xf32> to vector<8xf32>
    %77 = vector.shape_cast %76 : vector<8xf32> to vector<8x1xf32>
    %cst_41 = arith.constant 1.280000e+02 : f32
    %78 = vector.broadcast %cst_41 : f32 to vector<8x1xf32>
    %79 = arith.divf %77, %78 : vector<8x1xf32>
    %cst_42 = arith.constant 9.99999974E-6 : f32
    %80 = vector.broadcast %cst_42 : f32 to vector<8x1xf32>
    %81 = arith.addf %79, %80 : vector<8x1xf32>
    %82 = math.rsqrt %81 : vector<8x1xf32>
    %83 = vector.broadcast %82 : vector<8x1xf32> to vector<8x128xf32>
    %84 = arith.mulf %74, %83 : vector<8x128xf32>
    %85 = vector.broadcast %67 : vector<1x128xf32> to vector<8x128xf32>
    %86 = arith.mulf %84, %85 : vector<8x128xf32>
    %87 = vector.broadcast %68 : vector<1x128xf32> to vector<8x128xf32>
    %88 = arith.addf %86, %87 : vector<8x128xf32>
    %cst_43 = arith.constant 0.000000e+00 : f32
    %89 = vector.broadcast %cst_43 : f32 to vector<8x128xf32>
    %90 = arith.maximumf %88, %89 : vector<8x128xf32>
    %91 = arith.truncf %90 : vector<8x128xf32> to vector<8x128xbf16>
    %c0_44 = arith.constant 0 : index
    %c0_45 = arith.constant 0 : index
    %92 = vector.load %arg14[%c0_44, %c0_45] : memref<128x5xbf16, #tpu.memory_space<vmem>>, vector<128x5xbf16>
    %cst_46 = arith.constant dense<0.000000e+00> : vector<8x5xf32>
    %93 = tpu.matmul %91, %92, %cst_46 {dimension_numbers = #tpu.dot_dimension_numbers<[1], [0], [0], [1], [0, 0, 1, 1], [], []>} : vector<8x128xbf16>, vector<128x5xbf16>, vector<8x5xf32> -> vector<8x5xf32>
    %c0_47 = arith.constant 0 : index
    %c0_48 = arith.constant 0 : index
    %94 = vector.load %arg15[%c0_47, %c0_48] : memref<1x5xf32, #tpu.memory_space<vmem>>, vector<1x5xf32>
    %95 = vector.broadcast %94 : vector<1x5xf32> to vector<8x5xf32>
    %96 = arith.addf %93, %95 : vector<8x5xf32>
    %c0_49 = arith.constant 0 : index
    %c0_50 = arith.constant 0 : index
    %97 = vector.load %arg4[%c0_49, %c0_50] : memref<10x5xf32, #tpu.memory_space<vmem>>, vector<10x5xf32>
    %cst_51 = arith.constant dense<0.000000e+00> : vector<8x5xf32>
    %98 = tpu.matmul %2, %97, %cst_51 {dimension_numbers = #tpu.dot_dimension_numbers<[1], [0], [0], [1], [0, 0, 1, 1], [], []>} : vector<8x10xf32>, vector<10x5xf32>, vector<8x5xf32> -> vector<8x5xf32>
    %cst_52 = arith.constant 5.000000e-01 : f32
    %99 = vector.broadcast %cst_52 : f32 to vector<8x5xf32>
    %100 = arith.cmpf ogt, %98, %99 : vector<8x5xf32>
    %cst_53 = arith.constant -1.000000e+30 : f32
    %101 = vector.broadcast %cst_53 : f32 to vector<8x5xf32>
    %102 = arith.select %100, %96, %101 : vector<8x5xi1>, vector<8x5xf32>
    %cst_54 = arith.constant dense<0xFF800000> : vector<8xf32>
    %103 = vector.multi_reduction <maximumf>, %102, %cst_54 [1] : vector<8x5xf32> to vector<8xf32>
    %104 = vector.shape_cast %103 : vector<8xf32> to vector<8x1xf32>
    %105 = tpu.iota {dimensions = array<i32: 1>} : vector<8x5xi32>
    %106 = vector.broadcast %104 : vector<8x1xf32> to vector<8x5xf32>
    %107 = arith.cmpf oeq, %102, %106 : vector<8x5xf32>
    %c5_i32 = arith.constant 5 : i32
    %108 = vector.broadcast %c5_i32 : i32 to vector<8x5xi32>
    %109 = arith.select %107, %105, %108 : vector<8x5xi1>, vector<8x5xi32>
    %cst_55 = arith.constant dense<2147483647> : vector<8xi32>
    %110 = vector.multi_reduction <minsi>, %109, %cst_55 [1] : vector<8x5xi32> to vector<8xi32>
    %111 = vector.shape_cast %110 : vector<8xi32> to vector<8x1xi32>
    %112 = vector.broadcast %111 : vector<8x1xi32> to vector<8x5xi32>
    %113 = arith.cmpi eq, %105, %112 : vector<8x5xi32>
    %114 = arith.extui %113 : vector<8x5xi1> to vector<8x5xi32>
    %115 = arith.sitofp %114 : vector<8x5xi32> to vector<8x5xf32>
    %116 = vector.broadcast %104 : vector<8x1xf32> to vector<8x5xf32>
    %117 = arith.subf %102, %116 : vector<8x5xf32>
    %118 = math.exp %117 : vector<8x5xf32>
    %cst_56 = arith.constant dense<0.000000e+00> : vector<8xf32>
    %119 = vector.multi_reduction <add>, %118, %cst_56 [1] : vector<8x5xf32> to vector<8xf32>
    %120 = vector.shape_cast %119 : vector<8xf32> to vector<8x1xf32>
    %121 = math.log %120 : vector<8x1xf32>
    %122 = arith.addf %104, %121 : vector<8x1xf32>
    %123 = arith.mulf %115, %102 : vector<8x5xf32>
    %cst_57 = arith.constant dense<0.000000e+00> : vector<8xf32>
    %124 = vector.multi_reduction <add>, %123, %cst_57 [1] : vector<8x5xf32> to vector<8xf32>
    %125 = vector.shape_cast %124 : vector<8xf32> to vector<8x1xf32>
    %126 = arith.subf %125, %122 : vector<8x1xf32>
    %c0_58 = arith.constant 0 : index
    %c0_59 = arith.constant 0 : index
    %127 = vector.load %arg3[%c0_58, %c0_59] : memref<5x10xf32, #tpu.memory_space<vmem>>, vector<5x10xf32>
    %cst_60 = arith.constant dense<0.000000e+00> : vector<8x10xf32>
    %128 = tpu.matmul %115, %127, %cst_60 {dimension_numbers = #tpu.dot_dimension_numbers<[1], [0], [0], [1], [0, 0, 1, 1], [], []>} : vector<8x5xf32>, vector<5x10xf32>, vector<8x10xf32> -> vector<8x10xf32>
    %129 = arith.mulf %2, %128 : vector<8x10xf32>
    %c0_61 = arith.constant 0 : index
    %c0_62 = arith.constant 0 : index
    %130 = vector.load %arg5[%c0_61, %c0_62] : memref<10x2xf32, #tpu.memory_space<vmem>>, vector<10x2xf32>
    %cst_63 = arith.constant dense<0.000000e+00> : vector<8x2xf32>
    %131 = tpu.matmul %129, %130, %cst_63 {dimension_numbers = #tpu.dot_dimension_numbers<[1], [0], [0], [1], [0, 0, 1, 1], [], []>} : vector<8x10xf32>, vector<10x2xf32>, vector<8x2xf32> -> vector<8x2xf32>
    %132 = vector.extract_strided_slice %4 {offsets = [0, 128], sizes = [8, 128], strides = [1, 1]} : vector<8x512xf32> to vector<8x128xf32>
    %133 = arith.truncf %115 : vector<8x5xf32> to vector<8x5xbf16>
    %c0_64 = arith.constant 0 : index
    %c0_65 = arith.constant 0 : index
    %134 = vector.load %arg16[%c0_64, %c0_65] : memref<5x128xbf16, #tpu.memory_space<vmem>>, vector<5x128xbf16>
    %cst_66 = arith.constant dense<0.000000e+00> : vector<8x128xf32>
    %135 = tpu.matmul %133, %134, %cst_66 {dimension_numbers = #tpu.dot_dimension_numbers<[1], [0], [0], [1], [0, 0, 1, 1], [], []>} : vector<8x5xbf16>, vector<5x128xbf16>, vector<8x128xf32> -> vector<8x128xf32>
    %136 = arith.addf %132, %135 : vector<8x128xf32>
    %c0_67 = arith.constant 0 : index
    %c0_68 = arith.constant 0 : index
    %137 = vector.load %arg17[%c0_67, %c0_68] : memref<1x128xf32, #tpu.memory_space<vmem>>, vector<1x128xf32>
    %138 = vector.broadcast %137 : vector<1x128xf32> to vector<8x128xf32>
    %139 = arith.addf %136, %138 : vector<8x128xf32>
    %c0_69 = arith.constant 0 : index
    %c0_70 = arith.constant 0 : index
    %140 = vector.load %arg18[%c0_69, %c0_70] : memref<1x128xf32, #tpu.memory_space<vmem>>, vector<1x128xf32>
    %c0_71 = arith.constant 0 : index
    %c0_72 = arith.constant 0 : index
    %141 = vector.load %arg19[%c0_71, %c0_72] : memref<1x128xf32, #tpu.memory_space<vmem>>, vector<1x128xf32>
    %cst_73 = arith.constant dense<0.000000e+00> : vector<8xf32>
    %142 = vector.multi_reduction <add>, %139, %cst_73 [1] : vector<8x128xf32> to vector<8xf32>
    %143 = vector.shape_cast %142 : vector<8xf32> to vector<8x1xf32>
    %cst_74 = arith.constant 1.280000e+02 : f32
    %144 = vector.broadcast %cst_74 : f32 to vector<8x1xf32>
    %145 = arith.divf %143, %144 : vector<8x1xf32>
    %146 = vector.broadcast %145 : vector<8x1xf32> to vector<8x128xf32>
    %147 = arith.subf %139, %146 : vector<8x128xf32>
    %148 = arith.mulf %147, %147 : vector<8x128xf32>
    %cst_75 = arith.constant dense<0.000000e+00> : vector<8xf32>
    %149 = vector.multi_reduction <add>, %148, %cst_75 [1] : vector<8x128xf32> to vector<8xf32>
    %150 = vector.shape_cast %149 : vector<8xf32> to vector<8x1xf32>
    %cst_76 = arith.constant 1.280000e+02 : f32
    %151 = vector.broadcast %cst_76 : f32 to vector<8x1xf32>
    %152 = arith.divf %150, %151 : vector<8x1xf32>
    %cst_77 = arith.constant 9.99999974E-6 : f32
    %153 = vector.broadcast %cst_77 : f32 to vector<8x1xf32>
    %154 = arith.addf %152, %153 : vector<8x1xf32>
    %155 = math.rsqrt %154 : vector<8x1xf32>
    %156 = vector.broadcast %155 : vector<8x1xf32> to vector<8x128xf32>
    %157 = arith.mulf %147, %156 : vector<8x128xf32>
    %158 = vector.broadcast %140 : vector<1x128xf32> to vector<8x128xf32>
    %159 = arith.mulf %157, %158 : vector<8x128xf32>
    %160 = vector.broadcast %141 : vector<1x128xf32> to vector<8x128xf32>
    %161 = arith.addf %159, %160 : vector<8x128xf32>
    %cst_78 = arith.constant 0.000000e+00 : f32
    %162 = vector.broadcast %cst_78 : f32 to vector<8x128xf32>
    %163 = arith.maximumf %161, %162 : vector<8x128xf32>
    %164 = arith.truncf %163 : vector<8x128xf32> to vector<8x128xbf16>
    %c0_79 = arith.constant 0 : index
    %c0_80 = arith.constant 0 : index
    %165 = vector.load %arg20[%c0_79, %c0_80] : memref<128x128xbf16, #tpu.memory_space<vmem>>, vector<128x128xbf16>
    %cst_81 = arith.constant dense<0.000000e+00> : vector<8x128xf32>
    %166 = tpu.matmul %164, %165, %cst_81 {dimension_numbers = #tpu.dot_dimension_numbers<[1], [0], [0], [1], [0, 0, 1, 1], [], []>} : vector<8x128xbf16>, vector<128x128xbf16>, vector<8x128xf32> -> vector<8x128xf32>
    %c0_82 = arith.constant 0 : index
    %c0_83 = arith.constant 0 : index
    %167 = vector.load %arg21[%c0_82, %c0_83] : memref<1x128xf32, #tpu.memory_space<vmem>>, vector<1x128xf32>
    %168 = vector.broadcast %167 : vector<1x128xf32> to vector<8x128xf32>
    %169 = arith.addf %166, %168 : vector<8x128xf32>
    %c0_84 = arith.constant 0 : index
    %c0_85 = arith.constant 0 : index
    %170 = vector.load %arg22[%c0_84, %c0_85] : memref<1x128xf32, #tpu.memory_space<vmem>>, vector<1x128xf32>
    %c0_86 = arith.constant 0 : index
    %c0_87 = arith.constant 0 : index
    %171 = vector.load %arg23[%c0_86, %c0_87] : memref<1x128xf32, #tpu.memory_space<vmem>>, vector<1x128xf32>
    %cst_88 = arith.constant dense<0.000000e+00> : vector<8xf32>
    %172 = vector.multi_reduction <add>, %169, %cst_88 [1] : vector<8x128xf32> to vector<8xf32>
    %173 = vector.shape_cast %172 : vector<8xf32> to vector<8x1xf32>
    %cst_89 = arith.constant 1.280000e+02 : f32
    %174 = vector.broadcast %cst_89 : f32 to vector<8x1xf32>
    %175 = arith.divf %173, %174 : vector<8x1xf32>
    %176 = vector.broadcast %175 : vector<8x1xf32> to vector<8x128xf32>
    %177 = arith.subf %169, %176 : vector<8x128xf32>
    %178 = arith.mulf %177, %177 : vector<8x128xf32>
    %cst_90 = arith.constant dense<0.000000e+00> : vector<8xf32>
    %179 = vector.multi_reduction <add>, %178, %cst_90 [1] : vector<8x128xf32> to vector<8xf32>
    %180 = vector.shape_cast %179 : vector<8xf32> to vector<8x1xf32>
    %cst_91 = arith.constant 1.280000e+02 : f32
    %181 = vector.broadcast %cst_91 : f32 to vector<8x1xf32>
    %182 = arith.divf %180, %181 : vector<8x1xf32>
    %cst_92 = arith.constant 9.99999974E-6 : f32
    %183 = vector.broadcast %cst_92 : f32 to vector<8x1xf32>
    %184 = arith.addf %182, %183 : vector<8x1xf32>
    %185 = math.rsqrt %184 : vector<8x1xf32>
    %186 = vector.broadcast %185 : vector<8x1xf32> to vector<8x128xf32>
    %187 = arith.mulf %177, %186 : vector<8x128xf32>
    %188 = vector.broadcast %170 : vector<1x128xf32> to vector<8x128xf32>
    %189 = arith.mulf %187, %188 : vector<8x128xf32>
    %190 = vector.broadcast %171 : vector<1x128xf32> to vector<8x128xf32>
    %191 = arith.addf %189, %190 : vector<8x128xf32>
    %cst_93 = arith.constant 0.000000e+00 : f32
    %192 = vector.broadcast %cst_93 : f32 to vector<8x128xf32>
    %193 = arith.maximumf %191, %192 : vector<8x128xf32>
    %194 = arith.truncf %193 : vector<8x128xf32> to vector<8x128xbf16>
    %c0_94 = arith.constant 0 : index
    %c0_95 = arith.constant 0 : index
    %195 = vector.load %arg24[%c0_94, %c0_95] : memref<128x2xbf16, #tpu.memory_space<vmem>>, vector<128x2xbf16>
    %cst_96 = arith.constant dense<0.000000e+00> : vector<8x2xf32>
    %196 = tpu.matmul %194, %195, %cst_96 {dimension_numbers = #tpu.dot_dimension_numbers<[1], [0], [0], [1], [0, 0, 1, 1], [], []>} : vector<8x128xbf16>, vector<128x2xbf16>, vector<8x2xf32> -> vector<8x2xf32>
    %c0_97 = arith.constant 0 : index
    %c0_98 = arith.constant 0 : index
    %197 = vector.load %arg25[%c0_97, %c0_98] : memref<1x2xf32, #tpu.memory_space<vmem>>, vector<1x2xf32>
    %198 = vector.broadcast %197 : vector<1x2xf32> to vector<8x2xf32>
    %199 = arith.addf %196, %198 : vector<8x2xf32>
    %cst_99 = arith.constant 5.000000e-01 : f32
    %200 = vector.broadcast %cst_99 : f32 to vector<8x2xf32>
    %201 = arith.cmpf ogt, %131, %200 : vector<8x2xf32>
    %cst_100 = arith.constant -1.000000e+30 : f32
    %202 = vector.broadcast %cst_100 : f32 to vector<8x2xf32>
    %203 = arith.select %201, %199, %202 : vector<8x2xi1>, vector<8x2xf32>
    %cst_101 = arith.constant dense<0xFF800000> : vector<8xf32>
    %204 = vector.multi_reduction <maximumf>, %203, %cst_101 [1] : vector<8x2xf32> to vector<8xf32>
    %205 = vector.shape_cast %204 : vector<8xf32> to vector<8x1xf32>
    %206 = tpu.iota {dimensions = array<i32: 1>} : vector<8x2xi32>
    %207 = vector.broadcast %205 : vector<8x1xf32> to vector<8x2xf32>
    %208 = arith.cmpf oeq, %203, %207 : vector<8x2xf32>
    %c2_i32 = arith.constant 2 : i32
    %209 = vector.broadcast %c2_i32 : i32 to vector<8x2xi32>
    %210 = arith.select %208, %206, %209 : vector<8x2xi1>, vector<8x2xi32>
    %cst_102 = arith.constant dense<2147483647> : vector<8xi32>
    %211 = vector.multi_reduction <minsi>, %210, %cst_102 [1] : vector<8x2xi32> to vector<8xi32>
    %212 = vector.shape_cast %211 : vector<8xi32> to vector<8x1xi32>
    %213 = vector.broadcast %212 : vector<8x1xi32> to vector<8x2xi32>
    %214 = arith.cmpi eq, %206, %213 : vector<8x2xi32>
    %215 = arith.extui %214 : vector<8x2xi1> to vector<8x2xi32>
    %216 = arith.sitofp %215 : vector<8x2xi32> to vector<8x2xf32>
    %217 = vector.broadcast %205 : vector<8x1xf32> to vector<8x2xf32>
    %218 = arith.subf %203, %217 : vector<8x2xf32>
    %219 = math.exp %218 : vector<8x2xf32>
    %cst_103 = arith.constant dense<0.000000e+00> : vector<8xf32>
    %220 = vector.multi_reduction <add>, %219, %cst_103 [1] : vector<8x2xf32> to vector<8xf32>
    %221 = vector.shape_cast %220 : vector<8xf32> to vector<8x1xf32>
    %222 = math.log %221 : vector<8x1xf32>
    %223 = arith.addf %205, %222 : vector<8x1xf32>
    %224 = arith.mulf %216, %203 : vector<8x2xf32>
    %cst_104 = arith.constant dense<0.000000e+00> : vector<8xf32>
    %225 = vector.multi_reduction <add>, %224, %cst_104 [1] : vector<8x2xf32> to vector<8xf32>
    %226 = vector.shape_cast %225 : vector<8xf32> to vector<8x1xf32>
    %227 = arith.subf %226, %223 : vector<8x1xf32>
    %228 = arith.truncf %60 : vector<8x256xf32> to vector<8x256xbf16>
    %c0_105 = arith.constant 0 : index
    %c0_106 = arith.constant 0 : index
    %229 = vector.load %arg29[%c0_105, %c0_106] : memref<256x128xbf16, #tpu.memory_space<vmem>>, vector<256x128xbf16>
    %cst_107 = arith.constant dense<0.000000e+00> : vector<8x128xf32>
    %230 = tpu.matmul %228, %229, %cst_107 {dimension_numbers = #tpu.dot_dimension_numbers<[1], [0], [0], [1], [0, 0, 1, 1], [], []>} : vector<8x256xbf16>, vector<256x128xbf16>, vector<8x128xf32> -> vector<8x128xf32>
    %c0_108 = arith.constant 0 : index
    %c0_109 = arith.constant 0 : index
    %231 = vector.load %arg30[%c0_108, %c0_109] : memref<1x128xf32, #tpu.memory_space<vmem>>, vector<1x128xf32>
    %232 = vector.broadcast %231 : vector<1x128xf32> to vector<8x128xf32>
    %233 = arith.addf %230, %232 : vector<8x128xf32>
    %c0_110 = arith.constant 0 : index
    %c0_111 = arith.constant 0 : index
    %234 = vector.load %arg31[%c0_110, %c0_111] : memref<1x128xf32, #tpu.memory_space<vmem>>, vector<1x128xf32>
    %c0_112 = arith.constant 0 : index
    %c0_113 = arith.constant 0 : index
    %235 = vector.load %arg32[%c0_112, %c0_113] : memref<1x128xf32, #tpu.memory_space<vmem>>, vector<1x128xf32>
    %cst_114 = arith.constant dense<0.000000e+00> : vector<8xf32>
    %236 = vector.multi_reduction <add>, %233, %cst_114 [1] : vector<8x128xf32> to vector<8xf32>
    %237 = vector.shape_cast %236 : vector<8xf32> to vector<8x1xf32>
    %cst_115 = arith.constant 1.280000e+02 : f32
    %238 = vector.broadcast %cst_115 : f32 to vector<8x1xf32>
    %239 = arith.divf %237, %238 : vector<8x1xf32>
    %240 = vector.broadcast %239 : vector<8x1xf32> to vector<8x128xf32>
    %241 = arith.subf %233, %240 : vector<8x128xf32>
    %242 = arith.mulf %241, %241 : vector<8x128xf32>
    %cst_116 = arith.constant dense<0.000000e+00> : vector<8xf32>
    %243 = vector.multi_reduction <add>, %242, %cst_116 [1] : vector<8x128xf32> to vector<8xf32>
    %244 = vector.shape_cast %243 : vector<8xf32> to vector<8x1xf32>
    %cst_117 = arith.constant 1.280000e+02 : f32
    %245 = vector.broadcast %cst_117 : f32 to vector<8x1xf32>
    %246 = arith.divf %244, %245 : vector<8x1xf32>
    %cst_118 = arith.constant 9.99999974E-6 : f32
    %247 = vector.broadcast %cst_118 : f32 to vector<8x1xf32>
    %248 = arith.addf %246, %247 : vector<8x1xf32>
    %249 = math.rsqrt %248 : vector<8x1xf32>
    %250 = vector.broadcast %249 : vector<8x1xf32> to vector<8x128xf32>
    %251 = arith.mulf %241, %250 : vector<8x128xf32>
    %252 = vector.broadcast %234 : vector<1x128xf32> to vector<8x128xf32>
    %253 = arith.mulf %251, %252 : vector<8x128xf32>
    %254 = vector.broadcast %235 : vector<1x128xf32> to vector<8x128xf32>
    %255 = arith.addf %253, %254 : vector<8x128xf32>
    %cst_119 = arith.constant 0.000000e+00 : f32
    %256 = vector.broadcast %cst_119 : f32 to vector<8x128xf32>
    %257 = arith.maximumf %255, %256 : vector<8x128xf32>
    %258 = arith.truncf %257 : vector<8x128xf32> to vector<8x128xbf16>
    %c0_120 = arith.constant 0 : index
    %c0_121 = arith.constant 0 : index
    %259 = vector.load %arg33[%c0_120, %c0_121] : memref<128x64xbf16, #tpu.memory_space<vmem>>, vector<128x64xbf16>
    %cst_122 = arith.constant dense<0.000000e+00> : vector<8x64xf32>
    %260 = tpu.matmul %258, %259, %cst_122 {dimension_numbers = #tpu.dot_dimension_numbers<[1], [0], [0], [1], [0, 0, 1, 1], [], []>} : vector<8x128xbf16>, vector<128x64xbf16>, vector<8x64xf32> -> vector<8x64xf32>
    %c0_123 = arith.constant 0 : index
    %c0_124 = arith.constant 0 : index
    %261 = vector.load %arg34[%c0_123, %c0_124] : memref<1x64xf32, #tpu.memory_space<vmem>>, vector<1x64xf32>
    %262 = vector.broadcast %261 : vector<1x64xf32> to vector<8x64xf32>
    %263 = arith.addf %260, %262 : vector<8x64xf32>
    %c0_125 = arith.constant 0 : index
    %c0_126 = arith.constant 0 : index
    %264 = vector.load %arg35[%c0_125, %c0_126] : memref<1x64xf32, #tpu.memory_space<vmem>>, vector<1x64xf32>
    %c0_127 = arith.constant 0 : index
    %c0_128 = arith.constant 0 : index
    %265 = vector.load %arg36[%c0_127, %c0_128] : memref<1x64xf32, #tpu.memory_space<vmem>>, vector<1x64xf32>
    %cst_129 = arith.constant dense<0.000000e+00> : vector<8xf32>
    %266 = vector.multi_reduction <add>, %263, %cst_129 [1] : vector<8x64xf32> to vector<8xf32>
    %267 = vector.shape_cast %266 : vector<8xf32> to vector<8x1xf32>
    %cst_130 = arith.constant 6.400000e+01 : f32
    %268 = vector.broadcast %cst_130 : f32 to vector<8x1xf32>
    %269 = arith.divf %267, %268 : vector<8x1xf32>
    %270 = vector.broadcast %269 : vector<8x1xf32> to vector<8x64xf32>
    %271 = arith.subf %263, %270 : vector<8x64xf32>
    %272 = arith.mulf %271, %271 : vector<8x64xf32>
    %cst_131 = arith.constant dense<0.000000e+00> : vector<8xf32>
    %273 = vector.multi_reduction <add>, %272, %cst_131 [1] : vector<8x64xf32> to vector<8xf32>
    %274 = vector.shape_cast %273 : vector<8xf32> to vector<8x1xf32>
    %cst_132 = arith.constant 6.400000e+01 : f32
    %275 = vector.broadcast %cst_132 : f32 to vector<8x1xf32>
    %276 = arith.divf %274, %275 : vector<8x1xf32>
    %cst_133 = arith.constant 9.99999974E-6 : f32
    %277 = vector.broadcast %cst_133 : f32 to vector<8x1xf32>
    %278 = arith.addf %276, %277 : vector<8x1xf32>
    %279 = math.rsqrt %278 : vector<8x1xf32>
    %280 = vector.broadcast %279 : vector<8x1xf32> to vector<8x64xf32>
    %281 = arith.mulf %271, %280 : vector<8x64xf32>
    %282 = vector.broadcast %264 : vector<1x64xf32> to vector<8x64xf32>
    %283 = arith.mulf %281, %282 : vector<8x64xf32>
    %284 = vector.broadcast %265 : vector<1x64xf32> to vector<8x64xf32>
    %285 = arith.addf %283, %284 : vector<8x64xf32>
    %cst_134 = arith.constant 0.000000e+00 : f32
    %286 = vector.broadcast %cst_134 : f32 to vector<8x64xf32>
    %287 = arith.maximumf %285, %286 : vector<8x64xf32>
    %288 = arith.truncf %287 : vector<8x64xf32> to vector<8x64xbf16>
    %c0_135 = arith.constant 0 : index
    %c0_136 = arith.constant 0 : index
    %289 = vector.load %arg37[%c0_135, %c0_136] : memref<64x1xbf16, #tpu.memory_space<vmem>>, vector<64x1xbf16>
    %cst_137 = arith.constant dense<0.000000e+00> : vector<8x1xf32>
    %290 = tpu.matmul %288, %289, %cst_137 {dimension_numbers = #tpu.dot_dimension_numbers<[1], [0], [0], [1], [0, 0, 1, 1], [], []>} : vector<8x64xbf16>, vector<64x1xbf16>, vector<8x1xf32> -> vector<8x1xf32>
    %c0_138 = arith.constant 0 : index
    %c0_139 = arith.constant 0 : index
    %291 = vector.load %arg38[%c0_138, %c0_139] : memref<1x1xf32, #tpu.memory_space<vmem>>, vector<1x1xf32>
    %292 = vector.broadcast %291 : vector<1x1xf32> to vector<8x1xf32>
    %293 = arith.addf %290, %292 : vector<8x1xf32>
    %c2_i32_140 = arith.constant 2 : i32
    %294 = vector.broadcast %c2_i32_140 : i32 to vector<8x1xi32>
    %295 = arith.muli %111, %294 : vector<8x1xi32>
    %296 = arith.addi %295, %212 : vector<8x1xi32>
    %297 = arith.sitofp %296 : vector<8x1xi32> to vector<8x1xf32>
    %298 = arith.addf %126, %227 : vector<8x1xf32>
    %cst_141 = arith.constant 0.000000e+00 : f32
    %299 = vector.broadcast %cst_141 : f32 to vector<8x5xf32>
    %300 = tpu.concatenate %297, %293, %298, %299 in 1 : vector<8x1xf32>, vector<8x1xf32>, vector<8x1xf32>, vector<8x5xf32> -> vector<8x8xf32>
    %301 = tpu.transpose %300, [1, 0] : vector<8x8xf32> -> vector<8x8xf32>
    %c0_142 = arith.constant 0 : index
    %c0_143 = arith.constant 0 : index
    %302 = vector.load %arg39[%c0_142, %c0_143] : memref<8x8xf32, #tpu.memory_space<vmem>>, vector<8x8xf32>
    tpu.vector_store %arg39[%c0_142, %c0_143], %301 {strides = array<i32>} : memref<8x8xf32, #tpu.memory_space<vmem>>, vector<8x8xf32>,
    return
  }
  func.func @transform_0(%arg0: i32) -> (i32, i32) {
    %c0_i32 = arith.constant 0 : i32
    %c0_i32_0 = arith.constant 0 : i32
    return %arg0, %c0_i32 : i32, i32
  }
  func.func @transform_1(%arg0: i32) -> (i32, i32) {
    %c0_i32 = arith.constant 0 : i32
    %c0_i32_0 = arith.constant 0 : i32
    return %arg0, %c0_i32 : i32, i32
  }
  func.func @transform_2(%arg0: i32) -> (i32, i32) {
    %c0_i32 = arith.constant 0 : i32
    %c0_i32_0 = arith.constant 0 : i32
    %c0_i32_1 = arith.constant 0 : i32
    return %c0_i32, %c0_i32_0 : i32, i32
  }
  func.func @transform_3(%arg0: i32) -> (i32, i32) {
    %c0_i32 = arith.constant 0 : i32
    %c0_i32_0 = arith.constant 0 : i32
    %c0_i32_1 = arith.constant 0 : i32
    return %c0_i32, %c0_i32_0 : i32, i32
  }
  func.func @transform_4(%arg0: i32) -> (i32, i32) {
    %c0_i32 = arith.constant 0 : i32
    %c0_i32_0 = arith.constant 0 : i32
    %c0_i32_1 = arith.constant 0 : i32
    return %c0_i32, %c0_i32_0 : i32, i32
  }
  func.func @transform_5(%arg0: i32) -> (i32, i32) {
    %c0_i32 = arith.constant 0 : i32
    %c0_i32_0 = arith.constant 0 : i32
    %c0_i32_1 = arith.constant 0 : i32
    return %c0_i32, %c0_i32_0 : i32, i32
  }
  func.func @transform_6(%arg0: i32) -> (i32, i32) {
    %c0_i32 = arith.constant 0 : i32
    %c0_i32_0 = arith.constant 0 : i32
    %c0_i32_1 = arith.constant 0 : i32
    return %c0_i32, %c0_i32_0 : i32, i32
  }
  func.func @transform_7(%arg0: i32) -> (i32, i32) {
    %c0_i32 = arith.constant 0 : i32
    %c0_i32_0 = arith.constant 0 : i32
    %c0_i32_1 = arith.constant 0 : i32
    return %c0_i32, %c0_i32_0 : i32, i32
  }
  func.func @transform_8(%arg0: i32) -> (i32, i32) {
    %c0_i32 = arith.constant 0 : i32
    %c0_i32_0 = arith.constant 0 : i32
    %c0_i32_1 = arith.constant 0 : i32
    return %c0_i32, %c0_i32_0 : i32, i32
  }
  func.func @transform_9(%arg0: i32) -> (i32, i32) {
    %c0_i32 = arith.constant 0 : i32
    %c0_i32_0 = arith.constant 0 : i32
    %c0_i32_1 = arith.constant 0 : i32
    return %c0_i32, %c0_i32_0 : i32, i32
  }
  func.func @transform_10(%arg0: i32) -> (i32, i32) {
    %c0_i32 = arith.constant 0 : i32
    %c0_i32_0 = arith.constant 0 : i32
    %c0_i32_1 = arith.constant 0 : i32
    return %c0_i32, %c0_i32_0 : i32, i32
  }
  func.func @transform_11(%arg0: i32) -> (i32, i32) {
    %c0_i32 = arith.constant 0 : i32
    %c0_i32_0 = arith.constant 0 : i32
    %c0_i32_1 = arith.constant 0 : i32
    return %c0_i32, %c0_i32_0 : i32, i32
  }
  func.func @transform_12(%arg0: i32) -> (i32, i32) {
    %c0_i32 = arith.constant 0 : i32
    %c0_i32_0 = arith.constant 0 : i32
    %c0_i32_1 = arith.constant 0 : i32
    return %c0_i32, %c0_i32_0 : i32, i32
  }
  func.func @transform_13(%arg0: i32) -> (i32, i32) {
    %c0_i32 = arith.constant 0 : i32
    %c0_i32_0 = arith.constant 0 : i32
    %c0_i32_1 = arith.constant 0 : i32
    return %c0_i32, %c0_i32_0 : i32, i32
  }
  func.func @transform_14(%arg0: i32) -> (i32, i32) {
    %c0_i32 = arith.constant 0 : i32
    %c0_i32_0 = arith.constant 0 : i32
    %c0_i32_1 = arith.constant 0 : i32
    return %c0_i32, %c0_i32_0 : i32, i32
  }
  func.func @transform_15(%arg0: i32) -> (i32, i32) {
    %c0_i32 = arith.constant 0 : i32
    %c0_i32_0 = arith.constant 0 : i32
    %c0_i32_1 = arith.constant 0 : i32
    return %c0_i32, %c0_i32_0 : i32, i32
  }
  func.func @transform_16(%arg0: i32) -> (i32, i32) {
    %c0_i32 = arith.constant 0 : i32
    %c0_i32_0 = arith.constant 0 : i32
    %c0_i32_1 = arith.constant 0 : i32
    return %c0_i32, %c0_i32_0 : i32, i32
  }
  func.func @transform_17(%arg0: i32) -> (i32, i32) {
    %c0_i32 = arith.constant 0 : i32
    %c0_i32_0 = arith.constant 0 : i32
    %c0_i32_1 = arith.constant 0 : i32
    return %c0_i32, %c0_i32_0 : i32, i32
  }
  func.func @transform_18(%arg0: i32) -> (i32, i32) {
    %c0_i32 = arith.constant 0 : i32
    %c0_i32_0 = arith.constant 0 : i32
    %c0_i32_1 = arith.constant 0 : i32
    return %c0_i32, %c0_i32_0 : i32, i32
  }
  func.func @transform_19(%arg0: i32) -> (i32, i32) {
    %c0_i32 = arith.constant 0 : i32
    %c0_i32_0 = arith.constant 0 : i32
    %c0_i32_1 = arith.constant 0 : i32
    return %c0_i32, %c0_i32_0 : i32, i32
  }
  func.func @transform_20(%arg0: i32) -> (i32, i32) {
    %c0_i32 = arith.constant 0 : i32
    %c0_i32_0 = arith.constant 0 : i32
    %c0_i32_1 = arith.constant 0 : i32
    return %c0_i32, %c0_i32_0 : i32, i32
  }
  func.func @transform_21(%arg0: i32) -> (i32, i32) {
    %c0_i32 = arith.constant 0 : i32
    %c0_i32_0 = arith.constant 0 : i32
    %c0_i32_1 = arith.constant 0 : i32
    return %c0_i32, %c0_i32_0 : i32, i32
  }
  func.func @transform_22(%arg0: i32) -> (i32, i32) {
    %c0_i32 = arith.constant 0 : i32
    %c0_i32_0 = arith.constant 0 : i32
    %c0_i32_1 = arith.constant 0 : i32
    return %c0_i32, %c0_i32_0 : i32, i32
  }
  func.func @transform_23(%arg0: i32) -> (i32, i32) {
    %c0_i32 = arith.constant 0 : i32
    %c0_i32_0 = arith.constant 0 : i32
    %c0_i32_1 = arith.constant 0 : i32
    return %c0_i32, %c0_i32_0 : i32, i32
  }
  func.func @transform_24(%arg0: i32) -> (i32, i32) {
    %c0_i32 = arith.constant 0 : i32
    %c0_i32_0 = arith.constant 0 : i32
    %c0_i32_1 = arith.constant 0 : i32
    return %c0_i32, %c0_i32_0 : i32, i32
  }
  func.func @transform_25(%arg0: i32) -> (i32, i32) {
    %c0_i32 = arith.constant 0 : i32
    %c0_i32_0 = arith.constant 0 : i32
    %c0_i32_1 = arith.constant 0 : i32
    return %c0_i32, %c0_i32_0 : i32, i32
  }
  func.func @transform_26(%arg0: i32) -> (i32, i32) {
    %c0_i32 = arith.constant 0 : i32
    %c0_i32_0 = arith.constant 0 : i32
    %c0_i32_1 = arith.constant 0 : i32
    return %c0_i32, %c0_i32_0 : i32, i32
  }
  func.func @transform_27(%arg0: i32) -> (i32, i32) {
    %c0_i32 = arith.constant 0 : i32
    %c0_i32_0 = arith.constant 0 : i32
    %c0_i32_1 = arith.constant 0 : i32
    return %c0_i32, %c0_i32_0 : i32, i32
  }
  func.func @transform_28(%arg0: i32) -> (i32, i32) {
    %c0_i32 = arith.constant 0 : i32
    %c0_i32_0 = arith.constant 0 : i32
    %c0_i32_1 = arith.constant 0 : i32
    return %c0_i32, %c0_i32_0 : i32, i32
  }
  func.func @transform_29(%arg0: i32) -> (i32, i32) {
    %c0_i32 = arith.constant 0 : i32
    %c0_i32_0 = arith.constant 0 : i32
    %c0_i32_1 = arith.constant 0 : i32
    return %c0_i32, %c0_i32_0 : i32, i32
  }
  func.func @transform_30(%arg0: i32) -> (i32, i32) {
    %c0_i32 = arith.constant 0 : i32
    %c0_i32_0 = arith.constant 0 : i32
    %c0_i32_1 = arith.constant 0 : i32
    return %c0_i32, %c0_i32_0 : i32, i32
  }
  func.func @transform_31(%arg0: i32) -> (i32, i32) {
    %c0_i32 = arith.constant 0 : i32
    %c0_i32_0 = arith.constant 0 : i32
    %c0_i32_1 = arith.constant 0 : i32
    return %c0_i32, %c0_i32_0 : i32, i32
  }
  func.func @transform_32(%arg0: i32) -> (i32, i32) {
    %c0_i32 = arith.constant 0 : i32
    %c0_i32_0 = arith.constant 0 : i32
    %c0_i32_1 = arith.constant 0 : i32
    return %c0_i32, %c0_i32_0 : i32, i32
  }
  func.func @transform_33(%arg0: i32) -> (i32, i32) {
    %c0_i32 = arith.constant 0 : i32
    %c0_i32_0 = arith.constant 0 : i32
    %c0_i32_1 = arith.constant 0 : i32
    return %c0_i32, %c0_i32_0 : i32, i32
  }
  func.func @transform_34(%arg0: i32) -> (i32, i32) {
    %c0_i32 = arith.constant 0 : i32
    %c0_i32_0 = arith.constant 0 : i32
    %c0_i32_1 = arith.constant 0 : i32
    return %c0_i32, %c0_i32_0 : i32, i32
  }
  func.func @transform_35(%arg0: i32) -> (i32, i32) {
    %c0_i32 = arith.constant 0 : i32
    %c0_i32_0 = arith.constant 0 : i32
    %c0_i32_1 = arith.constant 0 : i32
    return %c0_i32, %c0_i32_0 : i32, i32
  }
  func.func @transform_36(%arg0: i32) -> (i32, i32) {
    %c0_i32 = arith.constant 0 : i32
    %c0_i32_0 = arith.constant 0 : i32
    %c0_i32_1 = arith.constant 0 : i32
    return %c0_i32, %c0_i32_0 : i32, i32
  }
  func.func @transform_37(%arg0: i32) -> (i32, i32) {
    %c0_i32 = arith.constant 0 : i32
    %c0_i32_0 = arith.constant 0 : i32
    %c0_i32_1 = arith.constant 0 : i32
    return %c0_i32, %c0_i32_0 : i32, i32
  }
  func.func @transform_38(%arg0: i32) -> (i32, i32) {
    %c0_i32 = arith.constant 0 : i32
    %c0_i32_0 = arith.constant 0 : i32
    return %c0_i32, %arg0 : i32, i32
  }
}

</mosaic_0001>

<bundles_post_ra>
// kernel: tpu_custom_call.1
= control target key start
LH: loop header
LB: loop body
LE: loop exit
PB: predicated region body
PF: predicated region fallthrough
CT: control target
= control target key end

     0   :  { %s3240_s6 = smov 1   ;;  %s3241_s10 = smov 2   ;;  %s3776_s0 = inlined_call_operand.smem [shape: u32[39], index: -1, kind: input, shape index: {}] }
   0x1   :  { %s3315_s5 = sld [smem:[%s3776_s0]]   ;;  %s3242_s14 = smov 3  }
   0x2   :  { %s3320_s9 = sld [smem:[%s3776_s0 + %s3240_s6]]   ;;  %s3243_s18 = smov 4  }
   0x3   :  { %s3325_s13 = sld [smem:[%s3776_s0 + %s3241_s10]]   ;;  %s3244_s22 = smov 5  }
   0x4   :  { %s3330_s17 = sld [smem:[%s3776_s0 + %s3242_s14]]   ;;  %s3245_s26 = smov 6  }
   0x5   :  { %s3335_s21 = sld [smem:[%s3776_s0 + %s3243_s18]]   ;;  %s3246_s30 = smov 7  }
   0x6   :  { %s3340_s25 = sld [smem:[%s3776_s0 + %s3244_s22]]   ;;  %s3247_s4 = smov 8  }
   0x7   :  { %s3345_s29 = sld [smem:[%s3776_s0 + %s3245_s26]]   ;;  %s3248_s10 = smov 9  }
   0x8   :  { %3784 = sst [smem:[#allocation49_spill]] %s3320_s9  ;;  %s3249_s15 = smov 10  }
   0x9   :  { %s3350_s3 = sld [smem:[%s3776_s0 + %s3246_s30]]   ;;  %s3250_s20 = smov 11  }
   0xa   :  { %3785 = sst [smem:[#allocation50_spill]] %s3330_s17  ;;  %s3251_s26 = smov 12  }
   0xb   :  { %3786 = sst [smem:[#allocation51_spill]] %s3335_s21  ;;  %s3252_s1 = smov 13  }
   0xc   :  { %3787 = sst [smem:[#allocation52_spill]] %s3340_s25  ;;  %s3253_s7 = smov 14  }
   0xd   :  { %s3355_s8 = sld [smem:[%s3776_s0 + %s3247_s4]]   ;;  %s3255_s22 = smov 16  }
   0xe   :  { %s3360_s14 = sld [smem:[%s3776_s0 + %s3248_s10]]   ;;  %s3256_s28 = smov 17  }
   0xf   :  { %s3365_s19 = sld [smem:[%s3776_s0 + %s3249_s15]]   ;;  %s3254_s15 = smov 15  }
  0x10   :  { %s3370_s24 = sld [smem:[%s3776_s0 + %s3250_s20]]   ;;  %s3277_s10 = smov 38  }
  0x11   :  { %s3375_s30 = sld [smem:[%s3776_s0 + %s3251_s26]]  }
  0x12   :  { %s3380_s6 = sld [smem:[%s3776_s0 + %s3252_s1]]  }
  0x13   :  { %s3385_s12 = sld [smem:[%s3776_s0 + %s3253_s7]]   ;;  %s3257_s7 = smov 18  }
  0x14   :  { %3788 = sst [smem:[#allocation53_spill]] %s3360_s14 }
  0x15   :  { %s3390_s20 = sld [smem:[%s3776_s0 + %s3254_s15]]   ;;  %s3258_s15 = smov 19  }
  0x16   :  { %3789 = sst [smem:[#allocation54_spill]] %s3370_s24 }
  0x17   :  { %s3395_s27 = sld [smem:[%s3776_s0 + %s3255_s22]]   ;;  %s3259_s22 = smov 20  }
  0x18   :  { %3790 = sst [smem:[#allocation55_spill]] %s3380_s6 }
  0x19   :  { %s3400_s4 = sld [smem:[%s3776_s0 + %s3256_s28]]   ;;  %s3260_s28 = smov 21  }
  0x1a   :  { %s3405_s21 = sld [smem:[%s3776_s0 + %s3257_s7]]   ;;  %s3261_s7 = smov 22  }
  0x1b   :  { %3791 = sst [smem:[#allocation56_spill]] %s3390_s20 }
  0x1c   :  { %s3410_s17 = sld [smem:[%s3776_s0 + %s3258_s15]]   ;;  %s3262_s15 = smov 23  }
  0x1d   :  { %s3415_s9 = sld [smem:[%s3776_s0 + %s3259_s22]]   ;;  %s3263_s22 = smov 24  }
  0x1e   :  { %s3420_s24 = sld [smem:[%s3776_s0 + %s3260_s28]]   ;;  %s3264_s28 = smov 25  }
  0x1f   :  { %3792 = sst [smem:[#allocation57_spill]] %s3400_s4 }
  0x20   :  { %s3425_s6 = sld [smem:[%s3776_s0 + %s3261_s7]]   ;;  %s3265_s7 = smov 26  }
  0x21   :  { %s3430_s14 = sld [smem:[%s3776_s0 + %s3262_s15]]   ;;  %s3266_s15 = smov 27  }
  0x22   :  { %3793 = sst [smem:[#allocation58_spill]] %s3410_s17 }
  0x23   :  { %s3435_s25 = sld [smem:[%s3776_s0 + %s3263_s22]]   ;;  %s3267_s22 = smov 28  }
  0x24   :  { %3794 = sst [smem:[#allocation59_spill]] %s3420_s24 }
  0x25   :  { %s3440_s24 = sld [smem:[%s3776_s0 + %s3264_s28]]   ;;  %s3268_s28 = smov 29  }
  0x26   :  { %s3445_s17 = sld [smem:[%s3776_s0 + %s3265_s7]]   ;;  %s3269_s7 = smov 30  }
  0x27   :  { %3795 = sst [smem:[#allocation60_spill]] %s3430_s14 }
  0x28   :  { %s3450_s14 = sld [smem:[%s3776_s0 + %s3266_s15]]   ;;  %s3270_s15 = smov 31  }
  0x29   :  { %3796 = sst [smem:[#allocation61_spill]] %s3435_s25 }
  0x2a   :  { %s3455_s25 = sld [smem:[%s3776_s0 + %s3267_s22]]   ;;  %s3271_s22 = smov 32  }
  0x2b   :  { %s3460_s4 = sld [smem:[%s3776_s0 + %s3268_s28]]   ;;  %s3272_s28 = smov 33  }
  0x2c   :  { %3797 = sst [smem:[#allocation62_spill]] %s3445_s17 }
  0x2d   :  { %s3465_s17 = sld [smem:[%s3776_s0 + %s3269_s7]]   ;;  %s3273_s7 = smov 34  }
  0x2e   :  { %s3470_s20 = sld [smem:[%s3776_s0 + %s3270_s15]]   ;;  %s3274_s15 = smov 35  }
  0x30   :  { %3798 = sst [smem:[#allocation63_spill]] %s3455_s25 }
  0x31   :  { %3799 = sst [smem:[#allocation64_spill]] %s3460_s4 }
  0x32   :  { %s3475_s25 = sld [smem:[%s3776_s0 + %s3271_s22]]   ;;  %s3275_s22 = smov 36  }
  0x33   :  { %3800 = sst [smem:[#allocation65_spill]] %s3465_s17 }
  0x34   :  { %3801 = sst [smem:[#allocation66_spill]] %s3470_s20 }
  0x35   :  { %s3480_s4 = sld [smem:[%s3776_s0 + %s3272_s28]]   ;;  %s3276_s28 = smov 37  }
  0x36   :  { %s3485_s17 = sld [smem:[%s3776_s0 + %s3273_s7]]  }
  0x37   :  { %s3490_s20 = sld [smem:[%s3776_s0 + %s3274_s15]]  }
  0x38   :  { %3802 = sst [smem:[#allocation67_spill]] %s3475_s25 }
  0x39   :  { %s3495_s25 = sld [smem:[%s3776_s0 + %s3275_s22]]  }
  0x3b   :  { %3803 = sst [smem:[#allocation68_spill]] %s3480_s4 }
  0x3c   :  { %3804 = sst [smem:[#allocation69_spill]] %s3485_s17 }
  0x3d   :  { %s2235_s4 = sld [smem:[%s3776_s0 + %s3276_s28]]  }
  0x3e   :  { %s3503_s17 = sld [smem:[%s3776_s0 + %s3277_s10]]  }
  0x43   :  { %v82_v0 = vstv %s2235_s4 }
  0x44   :  { %83 = vst [vmem:[#allocation2] sm:$0x1] %v82_v0 }
  0x45   :  { %84 = vsyncpa [#allocation4], 0 }
  0x46   :  { %85 = vsyncpa [#allocation7], 0 }
  0x47   :  { %86 = vsyncpa [#allocation10], 0 }
  0x48   :  { %87 = vsyncpa [#allocation13], 0 }
  0x49   :  { %88 = vsyncpa [#allocation16], 0 }
  0x4a   :  { %89 = vsyncpa [#allocation19], 0 }
  0x4b   :  { %90 = vsyncpa [#allocation22], 0 }
  0x4c   :  { %91 = vsyncpa [#allocation25], 0 }
  0x4d   :  { %92 = vsyncpa [#allocation28], 0 }
  0x4e   :  { %93 = vsyncpa [#allocation31], 0 }
  0x4f   :  { %94 = vsyncpa [#allocation34], 0 }
  0x50   :  { %95 = vsyncpa [#allocation5], 0  ;;  %s3278_s15 = smov [#allocation6]   ;;  %s3279_s18 = smov [#allocation9]  }
  0x51   :  { %s114_s16 = sshll.u32 %s3278_s15, 4  ;;  %s140_s22 = sshll.u32 %s3279_s18, 4  ;;  %s115_s16 = int_to_ptr.vmem [resolvable:$true] %s114_s16  ;;  %s141_s22 = int_to_ptr.vmem [resolvable:$true] %s140_s22 }
  0x52   :  { %s2784_s0 = scalar_lea.vmem %s115_s16, 128  ;;  %p2789_p1 = scmp.lt.s32.totalorder %s115_s16, %s115_s16 }
  0x53   :  { %p2785_p0 = scmp.ne.s32.totalorder %s115_s16, %s2784_s0  ;;  %p2790_p2 = scmp.lt.s32.totalorder %s2784_s0, %s2784_s0 }
  0x55   :  { %p2791_p3 = por %p2790_p2, %p2789_p1 }
  0x57   :  { %p2792_p4 = pnand %p2791_p3, %p2785_p0 }
  0x59   :  { %2795 = shalt.err (!%p2792_p4)
}
  0x5a   :  { %117 = dma.hbm_to_vmem [thread:$0]  %s3325_s13, 128, %s115_s16, [#allocation7]  }
  0x5b   :  { %s2804_s4 = scalar_lea.vmem %s141_s22, 16  ;;  %s2808_s23 = scalar_lea.vmem %s141_s22, 32 }
  0x5c   :  { %p2805_p5 = scmp.ne.s32.totalorder %s141_s22, %s2804_s4  ;;  %p2809_p6 = scmp.lt.s32.totalorder %s141_s22, %s141_s22 }
  0x5d   :  { %p2810_p7 = scmp.lt.s32.totalorder %s2808_s23, %s2804_s4 }
  0x5f   :  { %p2811_p8 = por %p2810_p7, %p2809_p6 }
  0x61   :  { %p2812_p9 = pnand %p2811_p8, %p2805_p5 }
  0x63   :  { %2815 = shalt.err (!%p2812_p9)
}
  0x64   :  { %143 = dma.hbm_to_vmem [thread:$0]  %s3350_s3, 16, %s141_s22, [#allocation10]  }
  0x65   :  { %s3280_s26 = smov [#allocation12]   ;;  %s3281_s1 = smov [#allocation15]  }
  0x66   :  { %s162_s28 = sshll.u32 %s3280_s26, 4  ;;  %s186_s2 = sshll.u32 %s3281_s1, 4  ;;  %s163_s28 = int_to_ptr.vmem [resolvable:$true] %s162_s28  ;;  %s187_s2 = int_to_ptr.vmem [resolvable:$true] %s186_s2 }
  0x67   :  { %s2824_s10 = scalar_lea.vmem %s163_s28, 16  ;;  %s2828_s7 = scalar_lea.vmem %s163_s28, 32 }
  0x68   :  { %p2825_p10 = scmp.ne.s32.totalorder %s163_s28, %s2824_s10  ;;  %p2829_p11 = scmp.lt.s32.totalorder %s163_s28, %s163_s28 }
  0x69   :  { %p2830_p12 = scmp.lt.s32.totalorder %s2828_s7, %s2824_s10 }
  0x6b   :  { %p2831_p13 = por %p2830_p12, %p2829_p11 }
  0x6d   :  { %p2832_p0 = pnand %p2831_p13, %p2825_p10 }
  0x6f   :  { %2835 = shalt.err (!%p2832_p0)
}
  0x70   :  { %165 = dma.hbm_to_vmem [thread:$0]  %s3365_s19, 16, %s163_s28, [#allocation13]  }
  0x71   :  { %s2844_s13 = scalar_lea.vmem %s187_s2, 16  ;;  %s2848_s11 = scalar_lea.vmem %s187_s2, 32 }
  0x72   :  { %p2845_p1 = scmp.ne.s32.totalorder %s187_s2, %s2844_s13  ;;  %p2849_p2 = scmp.lt.s32.totalorder %s187_s2, %s187_s2 }
  0x73   :  { %p2850_p3 = scmp.lt.s32.totalorder %s2848_s11, %s2844_s13 }
  0x75   :  { %p2851_p4 = por %p2850_p3, %p2849_p2 }
  0x77   :  { %p2852_p5 = pnand %p2851_p4, %p2845_p1 }
  0x79   :  { %2855 = shalt.err (!%p2852_p5)
}
  0x7a   :  { %189 = dma.hbm_to_vmem [thread:$0]  %s3385_s12, 16, %s187_s2, [#allocation16]  }
  0x7b   :  { %s3282_s3 = smov [#allocation18]   ;;  %s3283_s16 = smov [#allocation21]  }
  0x7c   :  { %s206_s15 = sshll.u32 %s3282_s3, 4  ;;  %s226_s18 = sshll.u32 %s3283_s16, 4  ;;  %s207_s15 = int_to_ptr.vmem [resolvable:$true] %s206_s15  ;;  %s227_s18 = int_to_ptr.vmem [resolvable:$true] %s226_s18 }
  0x7d   :  { %s2864_s22 = scalar_lea.vmem %s207_s15, 16  ;;  %s2868_s0 = scalar_lea.vmem %s207_s15, 32 }
  0x7e   :  { %p2865_p6 = scmp.ne.s32.totalorder %s207_s15, %s2864_s22  ;;  %p2869_p7 = scmp.lt.s32.totalorder %s207_s15, %s207_s15 }
  0x7f   :  { %p2870_p8 = scmp.lt.s32.totalorder %s2868_s0, %s2864_s22 }
  0x81   :  { %p2871_p9 = por %p2870_p8, %p2869_p7 }
  0x83   :  { %p2872_p10 = pnand %p2871_p9, %p2865_p6 }
  0x85   :  { %2875 = shalt.err (!%p2872_p10)
}
  0x86   :  { %209 = dma.hbm_to_vmem [thread:$0]  %s3395_s27, 16, %s207_s15, [#allocation19]  }
  0x87   :  { %s2884_s19 = scalar_lea.vmem %s227_s18, 16  ;;  %s2888_s4 = scalar_lea.vmem %s227_s18, 32 }
  0x88   :  { %p2885_p11 = scmp.ne.s32.totalorder %s227_s18, %s2884_s19  ;;  %p2889_p12 = scmp.lt.s32.totalorder %s227_s18, %s227_s18 }
  0x89   :  { %p2890_p13 = scmp.lt.s32.totalorder %s2888_s4, %s2884_s19 }
  0x8b   :  { %p2891_p0 = por %p2890_p13, %p2889_p12 }
  0x8d   :  { %p2892_p1 = pnand %p2891_p0, %p2885_p11 }
  0x8f   :  { %2895 = shalt.err (!%p2892_p1)
}
  0x90   :  { %229 = dma.hbm_to_vmem [thread:$0]  %s3405_s21, 16, %s227_s18, [#allocation22]  }
  0x91   :  { %s3284_s12 = smov [#allocation24]   ;;  %s3285_s26 = smov [#allocation27]  }
  0x92   :  { %s248_s23 = sshll.u32 %s3284_s12, 4  ;;  %s268_s28 = sshll.u32 %s3285_s26, 4  ;;  %s249_s23 = int_to_ptr.vmem [resolvable:$true] %s248_s23  ;;  %s269_s28 = int_to_ptr.vmem [resolvable:$true] %s268_s28 }
  0x93   :  { %s2904_s1 = scalar_lea.vmem %s249_s23, 16  ;;  %s2908_s2 = scalar_lea.vmem %s249_s23, 32 }
  0x94   :  { %p2905_p2 = scmp.ne.s32.totalorder %s249_s23, %s2904_s1  ;;  %p2909_p3 = scmp.lt.s32.totalorder %s249_s23, %s249_s23 }
  0x95   :  { %p2910_p4 = scmp.lt.s32.totalorder %s2908_s2, %s2904_s1 }
  0x97   :  { %p2911_p5 = por %p2910_p4, %p2909_p3 }
  0x99   :  { %p2912_p6 = pnand %p2911_p5, %p2905_p2 }
  0x9b   :  { %2915 = shalt.err (!%p2912_p6)
}
  0x9c   :  { %251 = dma.hbm_to_vmem [thread:$0]  %s3415_s9, 16, %s249_s23, [#allocation25]  }
  0x9d   :  { %s2924_s27 = scalar_lea.vmem %s269_s28, 16  ;;  %s2928_s10 = scalar_lea.vmem %s269_s28, 32 }
  0x9e   :  { %p2925_p7 = scmp.ne.s32.totalorder %s269_s28, %s2924_s27  ;;  %p2929_p8 = scmp.lt.s32.totalorder %s269_s28, %s269_s28 }
  0x9f   :  { %p2930_p9 = scmp.lt.s32.totalorder %s2928_s10, %s2924_s27 }
  0xa1   :  { %p2931_p10 = por %p2930_p9, %p2929_p8 }
  0xa3   :  { %p2932_p11 = pnand %p2931_p10, %p2925_p7 }
  0xa5   :  { %2935 = shalt.err (!%p2932_p11)
}
  0xa6   :  { %271 = dma.hbm_to_vmem [thread:$0]  %s3425_s6, 16, %s269_s28, [#allocation28]  }
  0xa7   :  { %s3286_s21 = smov [#allocation30]   ;;  %s3287_s13 = smov [#allocation33]  }
  0xa8   :  { %s290_s7 = sshll.u32 %s3286_s21, 4  ;;  %s310_s11 = sshll.u32 %s3287_s13, 4  ;;  %s291_s7 = int_to_ptr.vmem [resolvable:$true] %s290_s7  ;;  %s311_s11 = int_to_ptr.vmem [resolvable:$true] %s310_s11 }
  0xa9   :  { %s2944_s3 = scalar_lea.vmem %s291_s7, 32  ;;  %p2949_p13 = scmp.lt.s32.totalorder %s291_s7, %s291_s7 }
  0xaa   :  { %p2945_p12 = scmp.ne.s32.totalorder %s291_s7, %s2944_s3  ;;  %p2950_p0 = scmp.lt.s32.totalorder %s2944_s3, %s2944_s3 }
  0xac   :  { %p2951_p1 = por %p2950_p0, %p2949_p13 }
  0xae   :  { %p2952_p2 = pnand %p2951_p1, %p2945_p12 }
  0xb0   :  { %2955 = shalt.err (!%p2952_p2)
}
  0xb1   :  { %293 = dma.hbm_to_vmem [thread:$0]  %s3440_s24, 32, %s291_s7, [#allocation31]  }
  0xb2   :  { %s2964_s9 = scalar_lea.vmem %s311_s11, 32  ;;  %p2969_p4 = scmp.lt.s32.totalorder %s311_s11, %s311_s11 }
  0xb3   :  { %p2965_p3 = scmp.ne.s32.totalorder %s311_s11, %s2964_s9  ;;  %p2970_p5 = scmp.lt.s32.totalorder %s2964_s9, %s2964_s9 }
  0xb5   :  { %p2971_p6 = por %p2970_p5, %p2969_p4 }
  0xb7   :  { %p2972_p7 = pnand %p2971_p6, %p2965_p3 }
  0xb9   :  { %2975 = shalt.err (!%p2972_p7)
}
  0xba   :  { %313 = dma.hbm_to_vmem [thread:$0]  %s3450_s14, 32, %s311_s11, [#allocation34]  }
  0xbb   :  { %s3288_s6 = smov [#allocation3]   ;;  %s3289_s16 = smov [#allocation8]  }
  0xbc   :  { %s102_s15 = sshll.u32 %s3288_s6, 4  ;;  %s130_s18 = sshll.u32 %s3289_s16, 4  ;;  %s103_s15 = int_to_ptr.vmem [resolvable:$true] %s102_s15  ;;  %s131_s18 = int_to_ptr.vmem [resolvable:$true] %s130_s18 }
  0xbd   :  { %s2984_s22 = scalar_lea.vmem %s103_s15, 64  ;;  %p2989_p9 = scmp.lt.s32.totalorder %s103_s15, %s103_s15 }
  0xbe   :  { %p2985_p8 = scmp.ne.s32.totalorder %s103_s15, %s2984_s22  ;;  %p2990_p10 = scmp.lt.s32.totalorder %s2984_s22, %s2984_s22 }
  0xc0   :  { %p2991_p11 = por %p2990_p10, %p2989_p9 }
  0xc2   :  { %p2992_p12 = pnand %p2991_p11, %p2985_p8 }
  0xc4   :  { %2995 = shalt.err (!%p2992_p12)
}
  0xc5   :  { %105 = dma.hbm_to_vmem [thread:$0]  %s3315_s5, 64, %s103_s15, [#allocation4]  }
  0xc6   :  { %s3004_s24 = scalar_lea.vmem %s131_s18, 16  ;;  %s3008_s0 = scalar_lea.vmem %s131_s18, 32 }
  0xc7   :  { %p3005_p13 = scmp.ne.s32.totalorder %s131_s18, %s3004_s24  ;;  %p3009_p0 = scmp.lt.s32.totalorder %s131_s18, %s131_s18 }
  0xc8   :  { %p3010_p1 = scmp.lt.s32.totalorder %s3008_s0, %s3004_s24 }
  0xca   :  { %p3011_p2 = por %p3010_p1, %p3009_p0 }
  0xcc   :  { %p3012_p3 = pnand %p3011_p2, %p3005_p13 }
  0xce   :  { %3015 = shalt.err (!%p3012_p3)
}
  0xcf   :  { %133 = dma.hbm_to_vmem [thread:$0]  %s3345_s29, 16, %s131_s18, [#allocation7]  }
  0xd0   :  { %s3290_s14 = smov [#allocation11]   ;;  %s3291_s4 = smov [#allocation14]  }
  0xd1   :  { %s150_s19 = sshll.u32 %s3290_s14, 4  ;;  %s174_s12 = sshll.u32 %s3291_s4, 4  ;;  %s151_s19 = int_to_ptr.vmem [resolvable:$true] %s150_s19  ;;  %s175_s12 = int_to_ptr.vmem [resolvable:$true] %s174_s12 }
  0xd2   :  { %s3024_s23 = scalar_lea.vmem %s151_s19, 16  ;;  %s3028_s26 = scalar_lea.vmem %s151_s19, 32 }
  0xd3   :  { %p3025_p4 = scmp.ne.s32.totalorder %s151_s19, %s3024_s23  ;;  %p3029_p5 = scmp.lt.s32.totalorder %s151_s19, %s151_s19 }
  0xd4   :  { %p3030_p6 = scmp.lt.s32.totalorder %s3028_s26, %s3024_s23 }
  0xd6   :  { %p3031_p7 = por %p3030_p6, %p3029_p5 }
  0xd8   :  { %p3032_p8 = pnand %p3031_p7, %p3025_p4 }
  0xda   :  { %3035 = shalt.err (!%p3032_p8)
}
  0xdb   :  { %153 = dma.hbm_to_vmem [thread:$0]  %s3355_s8, 16, %s151_s19, [#allocation10]  }
  0xdc   :  { %s3044_s5 = scalar_lea.vmem %s175_s12, 16  ;;  %s3048_s28 = scalar_lea.vmem %s175_s12, 32 }
  0xdd   :  { %p3045_p9 = scmp.ne.s32.totalorder %s175_s12, %s3044_s5  ;;  %p3049_p10 = scmp.lt.s32.totalorder %s175_s12, %s175_s12 }
  0xde   :  { %p3050_p11 = scmp.lt.s32.totalorder %s3048_s28, %s3044_s5 }
  0xe0   :  { %p3051_p12 = por %p3050_p11, %p3049_p10 }
  0xe2   :  { %p3052_p13 = pnand %p3051_p12, %p3045_p9 }
  0xe4   :  { %3055 = shalt.err (!%p3052_p13)
}
  0xe5   :  { %177 = dma.hbm_to_vmem [thread:$0]  %s3375_s30, 16, %s175_s12, [#allocation13]  }
  0xe6   :  { %s3292_s29 = smov [#allocation17]   ;;  %s3293_s2 = smov [#allocation20]  }
  0xe7   :  { %s196_s1 = sshll.u32 %s3292_s29, 4  ;;  %s216_s27 = sshll.u32 %s3293_s2, 4  ;;  %s197_s1 = int_to_ptr.vmem [resolvable:$true] %s196_s1  ;;  %s217_s27 = int_to_ptr.vmem [resolvable:$true] %s216_s27 }
  0xe8   :  { %s3064_s10 = scalar_lea.vmem %s197_s1, 64  ;;  %p3069_p1 = scmp.lt.s32.totalorder %s197_s1, %s197_s1 }
  0xe9   :  { %p3065_p0 = scmp.ne.s32.totalorder %s197_s1, %s3064_s10  ;;  %p3070_p2 = scmp.lt.s32.totalorder %s3064_s10, %s3064_s10 }
  0xeb   :  { %p3071_p3 = por %p3070_p2, %p3069_p1 }
  0xed   :  { %p3072_p4 = pnand %p3071_p3, %p3065_p0 }
  0xef   :  { %3075 = shalt.err (!%p3072_p4)
}
  0xf0   :  { %s3805_s8 = sld [smem:[#allocation56_spill]]  ;;  %s3084_s21 = scalar_lea.vmem %s217_s27, 16 }
  0xf1   :  { %p3085_p5 = scmp.ne.s32.totalorder %s217_s27, %s3084_s21  ;;  %s3088_s7 = scalar_lea.vmem %s217_s27, 32 }
  0xf2   :  { %p3089_p6 = scmp.lt.s32.totalorder %s217_s27, %s217_s27  ;;  %p3090_p7 = scmp.lt.s32.totalorder %s3088_s7, %s3084_s21 }
  0xf4   :  { %p3091_p8 = por %p3090_p7, %p3089_p6 }
  0xf6   :  { %199 = dma.hbm_to_vmem [thread:$0]  %s3805_s8, 64, %s197_s1, [#allocation16]  }
  0xf7   :  { %p3092_p9 = pnand %p3091_p8, %p3085_p5 }
  0xf9   :  { %3095 = shalt.err (!%p3092_p9)
}
  0xfa   :  { %s3806_s30 = sld [smem:[#allocation57_spill]]  ;;  %s3294_s13 = smov [#allocation23]  }
  0xfb   :  { %s235_s11 = sshll.u32 %s3294_s13, 4  ;;  %s236_s11 = int_to_ptr.vmem [resolvable:$true] %s235_s11 }
  0xfc   :  { %s3104_s3 = scalar_lea.vmem %s236_s11, 1024  ;;  %p3109_p11 = scmp.lt.s32.totalorder %s236_s11, %s236_s11 }
  0xfd   :  { %p3105_p10 = scmp.ne.s32.totalorder %s236_s11, %s3104_s3  ;;  %p3110_p12 = scmp.lt.s32.totalorder %s3104_s3, %s3104_s3 }
  0xff   :  { %p3111_p13 = por %p3110_p12, %p3109_p11 }
 0x100   :  { %219 = dma.hbm_to_vmem [thread:$0]  %s3806_s30, 16, %s217_s27, [#allocation19]  }
 0x101   :  { %p3112_p0 = pnand %p3111_p13, %p3105_p10 }
 0x103   :  { %3115 = shalt.err (!%p3112_p0)
}
 0x104   :  { %s3295_s9 = smov 64   ;;  %s3807_s6 = sld [smem:[#allocation58_spill]] }
 0x105   :  { %s3296_s15 = smov 4   ;;  %s3297_s16 = smov [#allocation26]  }
 0x106   :  { %s258_s18 = sshll.u32 %s3297_s16, 4  ;;  %s3298_s22 = smov [#allocation29]   ;;  %s259_s18 = int_to_ptr.vmem [resolvable:$true] %s258_s18 }
 0x107   :  { %s280_s24 = sshll.u32 %s3298_s22, 4  ;;  %s3124_s0 = scalar_lea.vmem %s259_s18, 16  ;;  %s281_s24 = int_to_ptr.vmem [resolvable:$true] %s280_s24 }
 0x108   :  { %p3125_p1 = scmp.ne.s32.totalorder %s259_s18, %s3124_s0  ;;  %s3128_s14 = scalar_lea.vmem %s259_s18, 32 }
 0x109   :  { %p3129_p2 = scmp.lt.s32.totalorder %s259_s18, %s259_s18  ;;  %p3130_p3 = scmp.lt.s32.totalorder %s3128_s14, %s3124_s0 }
 0x10a   :  { %241 = dma.hbm_to_vmem [thread:$0]  %s3807_s6, 1024, %s236_s11, [#allocation22], %s3295_s9, %s3295_s9, %s3296_s15  }
 0x10b   :  { %p3131_p4 = por %p3130_p3, %p3129_p2 }
 0x10d   :  { %p3132_p5 = pnand %p3131_p4, %p3125_p1 }
 0x10f   :  { %3135 = shalt.err (!%p3132_p5)
}
 0x110   :  { %s3808_s19 = sld [smem:[#allocation59_spill]]  ;;  %s3144_s4 = scalar_lea.vmem %s281_s24, 16 }
 0x111   :  { %p3145_p6 = scmp.ne.s32.totalorder %s281_s24, %s3144_s4  ;;  %s3148_s12 = scalar_lea.vmem %s281_s24, 32 }
 0x112   :  { %p3149_p7 = scmp.lt.s32.totalorder %s281_s24, %s281_s24  ;;  %p3150_p8 = scmp.lt.s32.totalorder %s3148_s12, %s3144_s4 }
 0x114   :  { %p3151_p9 = por %p3150_p8, %p3149_p7 }
 0x116   :  { %261 = dma.hbm_to_vmem [thread:$0]  %s3808_s19, 16, %s259_s18, [#allocation25]  }
 0x117   :  { %p3152_p10 = pnand %p3151_p9, %p3145_p6 }
 0x119   :  { %3155 = shalt.err (!%p3152_p10)
}
 0x11a   :  { %s3809_s23 = sld [smem:[#allocation61_spill]]  ;;  %s3299_s26 = smov [#allocation32]  }
 0x11b   :  { %s300_s5 = sshll.u32 %s3299_s26, 4  ;;  %s3300_s28 = smov [#allocation35]   ;;  %s301_s5 = int_to_ptr.vmem [resolvable:$true] %s300_s5 }
 0x11c   :  { %s319_s29 = sshll.u32 %s3300_s28, 4  ;;  %s3164_s1 = scalar_lea.vmem %s301_s5, 32  ;;  %s320_s29 = int_to_ptr.vmem [resolvable:$true] %s319_s29 }
 0x11d   :  { %p3165_p11 = scmp.ne.s32.totalorder %s301_s5, %s3164_s1  ;;  %p3169_p12 = scmp.lt.s32.totalorder %s301_s5, %s301_s5 }
 0x11e   :  { %p3170_p13 = scmp.lt.s32.totalorder %s3164_s1, %s3164_s1 }
 0x120   :  { %283 = dma.hbm_to_vmem [thread:$0]  %s3809_s23, 16, %s281_s24, [#allocation28]  }
 0x121   :  { %p3171_p0 = por %p3170_p13, %p3169_p12 }
 0x123   :  { %p3172_p1 = pnand %p3171_p0, %p3165_p11 }
 0x125   :  { %3175 = shalt.err (!%p3172_p1)
}
 0x126   :  { %s3810_s2 = sld [smem:[#allocation62_spill]]  ;;  %s3184_s27 = scalar_lea.vmem %s320_s29, 2048 }
 0x127   :  { %p3185_p2 = scmp.ne.s32.totalorder %s320_s29, %s3184_s27  ;;  %p3189_p3 = scmp.lt.s32.totalorder %s320_s29, %s320_s29 }
 0x128   :  { %p3190_p4 = scmp.lt.s32.totalorder %s3184_s27, %s3184_s27 }
 0x12a   :  { %p3191_p5 = por %p3190_p4, %p3189_p3 }
 0x12c   :  { %303 = dma.hbm_to_vmem [thread:$0]  %s3810_s2, 32, %s301_s5, [#allocation31]  }
 0x12d   :  { %p3192_p6 = pnand %p3191_p5, %p3185_p2 }
 0x12f   :  { %3195 = shalt.err (!%p3192_p6)
}
 0x130   :  { %s3811_s10 = sld [smem:[#allocation63_spill]] }
 0x136   :  { %325 = dma.hbm_to_vmem [thread:$0]  %s3811_s10, 2048, %s320_s29, [#allocation34], %s3295_s9, %s3295_s9, %s3296_s15  }
 0x137   :  { %3216 = dma.done.wait [#allocation4], 64  }
 0x138   :  { %3217 = vsyncadd [#allocation4], 4294967232 }
 0x139   :  { %3218 = dma.done.wait [#allocation7], 144  }
 0x13a   :  { %3219 = vsyncadd [#allocation7], 4294967152 }
 0x13b   :  { %3220 = dma.done.wait [#allocation10], 32  }
 0x13c   :  { %3221 = vsyncadd [#allocation10], 4294967264 }
 0x13d   :  { %3222 = dma.done.wait [#allocation13], 32  }
 0x13e   :  { %3223 = vsyncadd [#allocation13], 4294967264 }
 0x13f   :  { %3224 = dma.done.wait [#allocation16], 80  }
 0x140   :  { %3225 = vsyncadd [#allocation16], 4294967216 }
 0x141   :  { %3226 = dma.done.wait [#allocation19], 32  }
 0x142   :  { %3227 = vsyncadd [#allocation19], 4294967264 }
 0x143   :  { %3228 = dma.done.wait [#allocation22], 1040  }
 0x144   :  { %3229 = vsyncadd [#allocation22], 4294966256 }
 0x145   :  { %3230 = dma.done.wait [#allocation25], 32  }
 0x146   :  { %3231 = vsyncadd [#allocation25], 4294967264 }
 0x147   :  { %3232 = dma.done.wait [#allocation28], 32  }
 0x148   :  { %3233 = vsyncadd [#allocation28], 4294967264 }
 0x149   :  { %3234 = dma.done.wait [#allocation31], 64  }
 0x14a   :  { %3235 = vsyncadd [#allocation31], 4294967232 }
 0x14b   :  { %3236 = dma.done.wait [#allocation34], 2080  }
 0x14c   :  { %3237 = vsyncadd [#allocation34], 4294965216  ;;  %s3812_s8 = sld [smem:[#allocation52_spill]]  ;;  %v3301_v1 = vmov 0   ;;  %v3548_v18 = vld [vmem:[#allocation3] sm:$0xf] }
 0x14d   :  { %636 = vmatprep.mubr.bf16.mxu0 %v3301_v1  ;;  %677 = vmatprep.mubr.bf16.mxu1 %v3301_v1  ;;  %s3813_s21 = sld [smem:[#allocation53_spill]]  ;;  %v2269_v19 = vld [vmem:[#allocation8] ss:$0 sm:$0xff]  ;;  %v3302_v26 = vmov 0.0   ;;  %vm3303_vm0 = vmmov 0   ;;  %vm1042_vm1 = vcmask 1041408  }
 0x14e   :  { %v2270_v42 = vld [vmem:[#allocation9] ss:$0 sm:$0xff]  ;;  %v2271_v44 = vld [vmem:[#allocation11] ss:$0 sm:$0xff]  ;;  %v2272_v49 = vld [vmem:[#allocation12] ss:$0 sm:$0xff] }
 0x14f   :  { %s3814_s7 = sld [smem:[#allocation55_spill]]  ;;  %vm1038_vm2 = vcmask 80896   ;;  %vm1118_vm3 = vcmask 39936   ;;  %vm1162_vm7 = vcmask 1044480   ;;  %vm1320_vm9 = vcmask 1042432  }
 0x150   :  { %s3815_s30 = sld [smem:[#allocation54_spill]]  ;;  %vm2014_vm10 = vcmask 523264   ;;  %vm1657_vm12 = vcmask 15360  }
 0x151   :  { %s3816_s13 = sld [smem:[#allocation49_spill]] }
 0x152   :  { %v2646_v2 = vld [vmem:[%s3812_s8 + $0xe4] ss:$16 sps:$4 sm:$0xff]   ;;  %v2648_v3 = vld [vmem:[%s3812_s8 + $0xe0] ss:$16 sps:$4 sm:$0xff]   ;;  %v2678_v55 = vld [vmem:[%s3812_s8 + $0xec] ss:$16 sps:$4 sm:$0xff]  }
 0x153   :  { %604 = vmatprep.subr.bf16.mxu0 %v2646_v2  ;;  %v2649_v4 = vld [vmem:[%s3812_s8 + $0xc4] ss:$16 sps:$4 sm:$0xff]   ;;  %v2651_v5 = vld [vmem:[%s3812_s8 + $0xc0] ss:$16 sps:$4 sm:$0xff]   ;;  %v2670_v25 = vld [vmem:[%s3813_s21 + $0x38] sm:$0xff]   ;;  %645 = vmatprep.subr.bf16.mxu1 %v2678_v55  ;;  %s3817_s11 = sld [smem:[#allocation50_spill]] }
 0x154   :  { %605 = vmatpush1.bf16.msra.mxu0 %v2648_v3  ;;  %v2652_v6 = vld [vmem:[%s3812_s8 + $0xa4] ss:$16 sps:$4 sm:$0xff]   ;;  %v2654_v7 = vld [vmem:[%s3812_s8 + $0xa0] ss:$16 sps:$4 sm:$0xff]   ;;  %v2672_v32 = vld [vmem:[%s3813_s21 + $0x28] sm:$0xff]   ;;  %s3818_s3 = sld [smem:[#allocation51_spill]] }
 0x155   :  { %606 = vmatprep.subr.bf16.mxu0 %v2649_v4  ;;  %v2655_v8 = vld [vmem:[%s3812_s8 + $0x84] ss:$16 sps:$4 sm:$0xff]   ;;  %v2657_v9 = vld [vmem:[%s3812_s8 + $0x80] ss:$16 sps:$4 sm:$0xff]   ;;  %v2674_v34 = vld [vmem:[%s3813_s21 + $0x18] sm:$0xff]   ;;  %s3819_s9 = sld [smem:[#allocation64_spill]] }
 0x156   :  { %v2658_v10 = vld [vmem:[%s3812_s8 + $0x64] ss:$16 sps:$4 sm:$0xff]   ;;  %v2660_v11 = vld [vmem:[%s3812_s8 + $0x60] ss:$16 sps:$4 sm:$0xff]   ;;  %v2676_v36 = vld [vmem:[%s3813_s21 + $0x8] sm:$0xff]   ;;  %s3820_s6 = sld [smem:[#allocation60_spill]] }
 0x157   :  { %v2661_v12 = vld [vmem:[%s3812_s8 + $0x44] ss:$16 sps:$4 sm:$0xff]   ;;  %v2663_v13 = vld [vmem:[%s3812_s8 + $0x40] ss:$16 sps:$4 sm:$0xff]   ;;  %v2680_v56 = vld [vmem:[%s3812_s8 + $0xe8] ss:$16 sps:$4 sm:$0xff]  }
 0x158   :  { %607 = vmatpush1.bf16.msra.mxu0 %v2651_v5  ;;  %v2664_v14 = vld [vmem:[%s3812_s8 + $0x24] ss:$16 sps:$4 sm:$0xff]   ;;  %v2666_v15 = vld [vmem:[%s3812_s8 + $0x20] ss:$16 sps:$4 sm:$0xff]   ;;  %v2681_v57 = vld [vmem:[%s3812_s8 + $0xcc] ss:$16 sps:$4 sm:$0xff]   ;;  %646 = vmatpush1.bf16.msra.mxu1 %v2680_v56 }
 0x159   :  { %608 = vmatprep.subr.bf16.mxu0 %v2652_v6  ;;  %v2667_v16 = vld [vmem:[%s3812_s8 + $0x4] ss:$16 sps:$4 sm:$0xff]   ;;  %v2669_v17 = vld [vmem:[%s3812_s8] ss:$16 sps:$4 sm:$0xff]   ;;  %v2683_v58 = vld [vmem:[%s3812_s8 + $0xc8] ss:$16 sps:$4 sm:$0xff]   ;;  %647 = vmatprep.subr.bf16.mxu1 %v2681_v57 }
 0x15a   :  { %v2671_v31 = vld [vmem:[%s3813_s21 + $0x30] sm:$0xff]   ;;  %v2673_v33 = vld [vmem:[%s3813_s21 + $0x20] sm:$0xff]   ;;  %v2684_v59 = vld [vmem:[%s3812_s8 + $0xac] ss:$16 sps:$4 sm:$0xff]   ;;  %s3821_s15 = sld [smem:[#allocation67_spill]] }
 0x15b   :  { %v2675_v35 = vld [vmem:[%s3813_s21 + $0x10] sm:$0xff]   ;;  %v2677_v37 = vld [vmem:[%s3813_s21] sm:$0xff]   ;;  %v2686_v60 = vld [vmem:[%s3812_s8 + $0xa8] ss:$16 sps:$4 sm:$0xff]   ;;  %s3822_s16 = sld [smem:[#allocation65_spill]] }
 0x15c   :  { %609 = vmatpush1.bf16.msra.mxu0 %v2654_v7  ;;  %648 = vmatpush1.bf16.msra.mxu1 %v2683_v58  ;;  %v2687_v61 = vld [vmem:[%s3812_s8 + $0x8c] ss:$16 sps:$4 sm:$0xff]   ;;  %v2689_v62 = vld [vmem:[%s3812_s8 + $0x88] ss:$16 sps:$4 sm:$0xff]   ;;  %s3823_s18 = sld [smem:[#allocation66_spill]] }
 0x15d   :  { %610 = vmatprep.subr.bf16.mxu0 %v2655_v8  ;;  %649 = vmatprep.subr.bf16.mxu1 %v2684_v59  ;;  %v2690_v63 = vld [vmem:[%s3812_s8 + $0x6c] ss:$16 sps:$4 sm:$0xff]   ;;  %v2692_v0 = vld [vmem:[%s3812_s8 + $0x68] ss:$16 sps:$4 sm:$0xff]   ;;  %s3824_s22 = sld [smem:[#allocation68_spill]] }
 0x15e   :  { %v2693_v1 = vld [vmem:[%s3812_s8 + $0x4c] ss:$16 sps:$4 sm:$0xff]   ;;  %v2695_v2 = vld [vmem:[%s3812_s8 + $0x48] ss:$16 sps:$4 sm:$0xff]   ;;  %s3825_s24 = sld [smem:[#allocation69_spill]] }
 0x15f   :  { %v2696_v3 = vld [vmem:[%s3812_s8 + $0x2c] ss:$16 sps:$4 sm:$0xff]   ;;  %v2698_v4 = vld [vmem:[%s3812_s8 + $0x28] ss:$16 sps:$4 sm:$0xff]  }
 0x160   :  { %611 = vmatpush1.bf16.msra.mxu0 %v2657_v9  ;;  %650 = vmatpush1.bf16.msra.mxu1 %v2686_v60  ;;  %v2699_v5 = vld [vmem:[%s3812_s8 + $0xc] ss:$16 sps:$4 sm:$0xff]   ;;  %v2701_v6 = vld [vmem:[%s3812_s8 + $0x8] ss:$16 sps:$4 sm:$0xff]  }
 0x161   :  { %612 = vmatprep.subr.bf16.mxu0 %v2658_v10  ;;  %651 = vmatprep.subr.bf16.mxu1 %v2687_v61  ;;  %v2702_v7 = vld [vmem:[%s3814_s7 + $0x38] sm:$0xff]   ;;  %v723_v61 = vld [vmem:[#allocation30] sm:$0x3] }
 0x164   :  { %613 = vmatpush1.bf16.msra.mxu0 %v2660_v11  ;;  %652 = vmatpush1.bf16.msra.mxu1 %v2689_v62 }
 0x165   :  { %614 = vmatprep.subr.bf16.mxu0 %v2661_v12  ;;  %653 = vmatprep.subr.bf16.mxu1 %v2690_v63  ;;  %v2703_v12 = vld [vmem:[%s3814_s7 + $0x30] sm:$0xff]  }
 0x168   :  { %615 = vmatpush1.bf16.msra.mxu0 %v2663_v13  ;;  %654 = vmatpush1.bf16.msra.mxu1 %v2692_v0  ;;  %v2704_v13 = vld [vmem:[%s3814_s7 + $0x28] sm:$0xff]  }
 0x169   :  { %616 = vmatprep.subr.bf16.mxu0 %v2664_v14  ;;  %655 = vmatprep.subr.bf16.mxu1 %v2693_v1  ;;  %v2705_v14 = vld [vmem:[%s3814_s7 + $0x20] sm:$0xff]  }
 0x16c   :  { %617 = vmatpush1.bf16.msra.mxu0 %v2666_v15  ;;  %656 = vmatpush1.bf16.msra.mxu1 %v2695_v2  ;;  %v2706_v15 = vld [vmem:[%s3814_s7 + $0x18] sm:$0xff]  }
 0x16d   :  { %618 = vmatprep.subr.bf16.mxu0 %v2667_v16  ;;  %657 = vmatprep.subr.bf16.mxu1 %v2696_v3  ;;  %v2707_v16 = vld [vmem:[%s3814_s7 + $0x10] sm:$0xff]  }
 0x170   :  { %619 = vmatpush1.bf16.msra.mxu0 %v2669_v17  ;;  %658 = vmatpush1.bf16.msra.mxu1 %v2698_v4  ;;  %v2708_v17 = vld [vmem:[%s3814_s7 + $0x8] sm:$0xff]  }
 0x171   :  { %2442 = vmatprep.subr.bf16.mxu0 %v3302_v26  ;;  %659 = vmatprep.subr.bf16.mxu1 %v2699_v5 }
 0x173   :  { %637 = vmatmul.mubr.bf16.vlgmr.msra.gmra.mxu0 %v3548_v18 }
 0x174   :  { %2443 = vmatpush3.bf16.msra.mxu0 %v2670_v25  ;;  %2458 = vmatprep.mubr.msk.bf16.mxu0 %vm3303_vm0, %v3302_v26 }
 0x175   :  { %2444 = vmatprep.subr.bf16.mxu0 %v3302_v26  ;;  %660 = vmatpush1.bf16.msra.mxu1 %v2701_v6 }
 0x176   :  { %2462 = vmatprep.subr.bf16.mxu1 %v3302_v26 }
 0x178   :  { %2445 = vmatpush3.bf16.msra.mxu0 %v2671_v31  ;;  %678 = vmatmul.mubr.bf16.vlgmr.msra.gmra.mxu1 %v3548_v18  ;;  %v2709_v18 = vld [vmem:[%s3814_s7] sm:$0xff]   ;;  %v2282_v31 = vld [vmem:[#allocation14] ss:$0 sm:$0xff] }
 0x179   :  { %2446 = vmatprep.subr.bf16.mxu0 %v3302_v26  ;;  %2463 = vmatpush3.bf16.msra.mxu1 %v2702_v7  ;;  %v1158_v7 = vld [vmem:[#allocation6] sm:$0x1f] }
 0x17a   :  { %2478 = vmatprep.mubr.msk.bf16.mxu1 %vm3303_vm0, %v3302_v26  ;;  %2464 = vmatprep.subr.bf16.mxu1 %v3302_v26 }
 0x17c   :  { %2447 = vmatpush3.bf16.msra.mxu0 %v2672_v32 }
 0x17d   :  { %2448 = vmatprep.subr.bf16.mxu0 %v3302_v26  ;;  %2465 = vmatpush3.bf16.msra.mxu1 %v2703_v12 }
 0x17e   :  { %2466 = vmatprep.subr.bf16.mxu1 %v3302_v26 }
 0x180   :  { %2449 = vmatpush3.bf16.msra.mxu0 %v2673_v33 }
 0x181   :  { %2450 = vmatprep.subr.bf16.mxu0 %v3302_v26  ;;  %2467 = vmatpush3.bf16.msra.mxu1 %v2704_v13 }
 0x182   :  { %2468 = vmatprep.subr.bf16.mxu1 %v3302_v26 }
 0x184   :  { %2451 = vmatpush3.bf16.msra.mxu0 %v2674_v34 }
 0x185   :  { %2452 = vmatprep.subr.bf16.mxu0 %v3302_v26  ;;  %2469 = vmatpush3.bf16.msra.mxu1 %v2705_v14 }
 0x186   :  { %2470 = vmatprep.subr.bf16.mxu1 %v3302_v26 }
 0x188   :  { %2453 = vmatpush3.bf16.msra.mxu0 %v2675_v35  ;;  %v409_v35 = vld [vmem:[%s3816_s13] sm:$0x3] }
 0x189   :  { %2454 = vmatprep.subr.bf16.mxu0 %v3302_v26  ;;  %2471 = vmatpush3.bf16.msra.mxu1 %v2706_v15 }
 0x18a   :  { %2472 = vmatprep.subr.bf16.mxu1 %v3302_v26 }
 0x18c   :  { %2455 = vmatpush3.bf16.msra.mxu0 %v2676_v36 }
 0x18d   :  { %2456 = vmatprep.subr.bf16.mxu0 %v3302_v26  ;;  %2473 = vmatpush3.bf16.msra.mxu1 %v2707_v16 }
 0x18e   :  { %2474 = vmatprep.subr.bf16.mxu1 %v3302_v26 }
 0x190   :  { %2457 = vmatpush3.bf16.msra.mxu0 %v2677_v37  ;;  %v1037_v37 = vld [vmem:[%s3817_s11 + $0x8] sm:$0x3] }
 0x191   :  { %2507 = vmatprep.subr.bf16.mxu0 %v3302_v26  ;;  %2475 = vmatpush3.bf16.msra.mxu1 %v2708_v17 }
 0x192   :  { %2476 = vmatprep.subr.bf16.mxu1 %v3302_v26 }
 0x195   :  { %2477 = vmatpush3.bf16.msra.mxu1 %v2709_v18 }
 0x196   :  { %2482 = vmatprep.subr.mxu1 %v3302_v26 }
 0x233   :  { %v638_v20 = vpop.f32.mrf.mxu0 }
 0x234   :  { %v693_v21 = vadd.f32 %v2269_v19, %v638_v20 }
 0x235   :  { %v3551_v22 = vpop.f32.mrf.mxu0 }
 0x236   :  { %696 = vadd.xlane.f32.xlu0 %v693_v21 }
 0x237   :  { %v642_v23 = vpop.f32.mrf.mxu0 }
 0x238   :  { %v679_v19 = vpop.f32.mrf.mxu1 }
 0x239   :  { %v643_v24 = vpop.f32.mrf.mxu0 }
 0x23a   :  { %v681_v20 = vpop.f32.mrf.mxu1 }
 0x2bf   :  { %v697_v27 = vpop.xlane.xlu0 %696 }
 0x2c0   :  { %v699_v28 = vmul.f32 0.0078125, %v697_v27 }
 0x2c2   :  { %v700_v29 = vsub.f32 %v693_v21, %v699_v28  ;;  %v683_v21 = vpop.f32.mrf.mxu1 }
 0x2c3   :  { %v1238_v21 = vld [vmem:[%s3818_s3 + $0x8] sm:$0x3] }
 0x2c4   :  { %v701_v30 = vmul.f32 %v700_v29, %v700_v29  ;;  %v684_v23 = vpop.f32.mrf.mxu1 }
 0x2c5   :  { %v1237_v23 = vld [vmem:[%s3818_s3] sm:$0xff] }
 0x2c6   :  { %702 = vadd.xlane.f32.xlu0 %v701_v30 }
 0x34f   :  { %v703_v38 = vpop.xlane.xlu0 %702 }
 0x350   :  { %v704_v39 = vmul.f32 0.0078125, %v703_v38  ;;  %v1036_v38 = vld [vmem:[%s3817_s11] sm:$0xff] }
 0x352   :  { %v705_v40 = vadd.f32 1e-05, %v704_v39  ;;  %v410_v39 = vunpack.c.0.s8 %v409_v35 }
 0x354   :  { %2754 = vrsqrt.f32 %v705_v40  ;;  %v3618_v40 = vcvt.s32.f32 %v410_v39 }
 0x361   :  { %v2755_v41 = vpop.eup %2754 }
 0x362   :  { %v707_v43 = vmul.f32 %v2755_v41, %v700_v29  ;;  %v2281_v29 = vld [vmem:[%s3815_s30] ss:$0 sm:$0xff] }
 0x364   :  { %v714_v45 = vmul.f32 %v2270_v42, %v707_v43 }
 0x366   :  { %v721_v46 = vadd.f32 %v2271_v44, %v714_v45  ;;  %v2283_v44 = vld [vmem:[#allocation15] ss:$0 sm:$0xff] }
 0x368   :  { %v722_v47 = vmax.f32 %v721_v46, 0.0 }
 0x36a   :  { %v784_v48 = vpack.c.bf16 %v722_v47, %v722_v47 }
 0x36c   :  { %2459 = vmatmul.mubr.bf16.vlgmr.msra.gmra.mxu0 %v784_v48 }
 0x36d   :  { %2523 = vmatprep.mubr.msk.bf16.mxu0 %vm3303_vm0, %v3302_v26 }
 0x42c   :  { %v890_v50 = vpop.f32.mrf.mxu0 }
 0x42d   :  { %v891_v51 = vadd.f32 %v2272_v49, %v890_v50 }
 0x42e   :  { %v2460_v52 = vpop.f32.mrf.mxu0 }
 0x42f   :  { %898 = vadd.xlane.f32.xlu1 %v891_v51 }
 0x430   :  { %v893_v53 = vpop.f32.mrf.mxu0 }
 0x432   :  { %v2461_v54 = vpop.f32.mrf.mxu0 }
 0x4b8   :  { %v899_v8 = vpop.xlane.xlu1 %898 }
 0x4b9   :  { %v900_v9 = vmul.f32 0.0078125, %v899_v8 }
 0x4bb   :  { %v901_v10 = vsub.f32 %v891_v51, %v900_v9  ;;  %v725_v51 = vlaneseq }
 0x4bd   :  { %v902_v11 = vmul.f32 %v901_v10, %v901_v10  ;;  %v3629_v52 = vand.u32 127, %v725_v51  ;;  %v726_v58 = vshrl.u32 %v725_v51, 7  ;;  %v2714_v51 = vld [vmem:[#allocation23 + $0x18] sm:$0xff]  }
 0x4bf   :  { %903 = vadd.xlane.f32.xlu1 %v902_v11  ;;  %v3637_v59 = vsub.s32 0, %v726_v58  ;;  %v3639_v60 = vsub.s32 1, %v726_v58 }
 0x4c1   :  { %v728_v63 = vrot.slane %v723_v61, %v3637_v59  ;;  %v732_v0 = vrot.slane %v723_v61, %v3639_v60 }
 0x4c3   :  { %v735_v3 = vadd.f32 %v728_v63, %v679_v19  ;;  %v736_v4 = vadd.f32 %v732_v0, %v681_v20 }
 0x4c5   :  { %v739_v6 = vadd.f32 %v736_v4, %v735_v3 }
 0x548   :  { %v904_v24 = vpop.xlane.xlu1 %903 }
 0x549   :  { %v905_v25 = vmul.f32 0.0078125, %v904_v24  ;;  %v3304_v24 = vmov 65535  }
 0x54b   :  { %v906_v27 = vadd.f32 1e-05, %v905_v25  ;;  %v1321_v25 = vsel %vm1042_vm1, 4294967295, %v3304_v24 }
 0x54d   :  { %2756 = vrsqrt.f32 %v906_v27  ;;  %v1316_v27 = vld [vmem:[#allocation17] sm:$0x7] }
 0x55a   :  { %v2757_v28 = vpop.eup %2756 }
 0x55b   :  { %v908_v30 = vmul.f32 %v2757_v28, %v901_v10  ;;  %v1322_v28 = vsel %vm1320_vm9, %v1321_v25, 0  ;;  %v2720_v25 = vld [vmem:[#allocation35 + $0x70] sm:$0xff]  }
 0x55d   :  { %v915_v32 = vmul.f32 %v2281_v29, %v908_v30  ;;  %v1324_v30 = vand.u32 %v1322_v28, %v1316_v27  ;;  %v2722_v28 = vld [vmem:[#allocation35 + $0x68] sm:$0xff]  }
 0x55f   :  { %v922_v33 = vadd.f32 %v2282_v31, %v915_v32 }
 0x561   :  { %v923_v34 = vmax.f32 %v922_v33, 0.0 }
 0x563   :  { %v924_v36 = vpack.c.bf16 %v923_v34, %v923_v34 }
 0x565   :  { %2479 = vmatmul.mubr.bf16.vlgmr.msra.gmra.mxu1 %v924_v36 }
 0x566   :  { %2483 = vmatpush3.msk.msra.mxu1 %vm1042_vm1, %v1037_v37  ;;  %2486 = vmatprep.mubr.msk.f32.mxu1 %vm3303_vm0, %v3302_v26  ;;  %v2300_v37 = vld [vmem:[#allocation18] ss:$0 sm:$0xff] }
 0x567   :  { %2484 = vmatprep.subr.mxu1 %v3302_v26 }
 0x568   :  { %2485 = vmatpush3.msra.mxu1 %v1036_v38 }
 0x569   :  { %2489 = vmatprep.subr.mxu1 %v3302_v26 }
 0x56d   :  { %2487 = vmatmul.mubr.msk.f32.vlgmr.msra.gmra.mxu1 %vm1038_vm2, %v3618_v40 }
 0x56e   :  { %2491 = vmatprep.mubr.msk.f32.mxu1 %vm3303_vm0, %v3302_v26  ;;  %2490 = vmatpush3.msk.msra.mxu1 %vm1162_vm7, %v1158_v7 }
 0x56f   :  { %2494 = vmatprep.subr.mxu1 %v3302_v26 }
 0x625   :  { %v1030_v41 = vpop.f32.mrf.mxu1 }
 0x626   :  { %v1031_v46 = vadd.f32 %v2283_v44, %v1030_v41 }
 0x627   :  { %v2480_v42 = vpop.f32.mrf.mxu1 }
 0x629   :  { %v1033_v43 = vpop.f32.mrf.mxu1 }
 0x62a   :  { %v2710_v43 = vld [vmem:[#allocation23 + $0x38] sm:$0xff]  }
 0x62b   :  { %v2481_v45 = vpop.f32.mrf.mxu1  ;;  %2508 = vmatpush3.bf16.msra.mxu0 %v2710_v43 }
 0x62c   :  { %2509 = vmatprep.subr.bf16.mxu0 %v3302_v26 }
 0x62d   :  { %v1112_v47 = vpop.f32.mrf.mxu1 }
 0x62e   :  { %vm1116_vm4 = vcmp.gt.f32.partialorder %v1112_v47, 0.5 }
 0x62f   :  { %v3625_v48 = vsel %vm1116_vm4, %v1031_v46, -1e+30  ;;  %v2488_v49 = vpop.f32.mrf.mxu1 }
 0x630   :  { %v1119_v50 = vsel %vm1118_vm3, %v3625_v48, -inf  ;;  %v2711_v49 = vld [vmem:[#allocation23 + $0x30] sm:$0xff]  }
 0x631   :  { %1120 = vmax.xlane.f32.xlu0 %v1119_v50  ;;  %2510 = vmatpush3.bf16.msra.mxu0 %v2711_v49  ;;  %v2712_v50 = vld [vmem:[#allocation23 + $0x28] sm:$0xff]  }
 0x632   :  { %2511 = vmatprep.subr.bf16.mxu0 %v3302_v26 }
 0x635   :  { %2512 = vmatpush3.bf16.msra.mxu0 %v2712_v50 }
 0x636   :  { %2513 = vmatprep.subr.bf16.mxu0 %v3302_v26 }
 0x6ba   :  { %v3631_v53 = vpop.xlane.xlu0 %1120 }
 0x6bb   :  { %vm1124_vm5 = vcmp.eq.f32.partialorder %v3625_v48, %v3631_v53 }
 0x6bc   :  { %v1125_v54 = vsel %vm1124_vm5, %v3629_v52, 5 }
 0x6bd   :  { %v1126_v55 = vsel %vm1118_vm3, %v1125_v54, 2147483647  ;;  %v2715_v54 = vld [vmem:[#allocation23 + $0x10] sm:$0xff]  }
 0x6be   :  { %v1128_v56 = vshra.s32 %v1126_v55, 16  ;;  %v1127_v62 = vand.u32 65535, %v1126_v55  ;;  %v2716_v55 = vld [vmem:[#allocation23 + $0x8] sm:$0xff]  }
 0x6c0   :  { %v1130_v57 = vcvt.s32.f32 %v1128_v56  ;;  %v1129_v2 = vcvt.s32.f32 %v1127_v62  ;;  %v2717_v56 = vld [vmem:[#allocation23] sm:$0xff]  }
 0x6c2   :  { %1131 = vmin.xlane.f32.xlu1 %v1130_v57 }
 0x74b   :  { %v1132_v1 = vpop.xlane.xlu1 %1131 }
 0x74c   :  { %vm1133_vm6 = vcmp.eq.f32.partialorder %v1130_v57, %v1132_v1  ;;  %v1138_v8 = vcvt.f32.s32 %v1132_v1  ;;  %v2718_v57 = vld [vmem:[#allocation35 + $0x78] sm:$0xff]  }
 0x74d   :  { %v1134_v5 = vsel %vm1133_vm6, %v1129_v2, inf }
 0x74e   :  { %1135 = vmin.xlane.f32.xlu0 %v1134_v5  ;;  %v1139_v10 = vshll.u32 %v1138_v8, 16 }
 0x752   :  { %740 = vadd.xlane.f32.xlu0 %v739_v6  ;;  %v738_v6 = vld [vmem:[#allocation33] sm:$0x3] }
 0x753   :  { %v777_v8 = vrot.slane %v738_v6, %v3639_v60 }
 0x7d7   :  { %v1136_v9 = vpop.xlane.xlu0 %1135 }
 0x7d8   :  { %v1137_v11 = vcvt.f32.s32 %v1136_v9 }
 0x7da   :  { %v3644_v12 = vadd.s32 %v1139_v10, %v1137_v11  ;;  %v2301_v10 = vld [vmem:[#allocation20] ss:$0 sm:$0xff] }
 0x7db   :  { %v741_v13 = vpop.xlane.xlu0 %740 }
 0x7dc   :  { %vm1141_vm8 = vcmp.eq.s32.totalorder %v3629_v52, %v3644_v12  ;;  %v743_v14 = vmul.f32 0.00390625, %v741_v13  ;;  %v2302_v13 = vld [vmem:[#allocation21] ss:$0 sm:$0xff] }
 0x7dd   :  { %v3649_v15 = vsel %vm1141_vm8, 1.0, %v3302_v26 }
 0x7de   :  { %v3651_v16 = vsub.f32 %v735_v3, %v743_v14  ;;  %v3653_v17 = vsub.f32 %v736_v4, %v743_v14  ;;  %2492 = vmatmul.mubr.msk.f32.vlgmr.msra.gmra.mxu1 %vm1118_vm3, %v3649_v15  ;;  %v1315_v33 = vpack.c.bf16 %v3649_v15, %v3649_v15  ;;  %v737_v3 = vld [vmem:[#allocation32] sm:$0x3] }
 0x7df   :  { %2498 = vmatprep.mubr.msk.f32.mxu1 %vm3303_vm0, %v3302_v26  ;;  %2495 = vmatpush3.msk.msra.mxu1 %vm1042_vm1, %v1238_v21  ;;  %v764_v5 = vrot.slane %v737_v3, %v3639_v60  ;;  %v2723_v60 = vld [vmem:[#allocation35 + $0x28] sm:$0xff]   ;;  %vm2138_vm1 = vcmask 23552  }
 0x7e0   :  { %v746_v18 = vmul.f32 %v3651_v16, %v3651_v16  ;;  %v747_v19 = vmul.f32 %v3653_v17, %v3653_v17  ;;  %2496 = vmatprep.subr.mxu1 %v3302_v26 }
 0x7e1   :  { %2497 = vmatpush3.msra.mxu1 %v1237_v23  ;;  %v2719_v23 = vld [vmem:[#allocation35 + $0x38] sm:$0xff]  }
 0x7e2   :  { %v748_v20 = vadd.f32 %v747_v19, %v746_v18  ;;  %2501 = vmatprep.subr.bf16.mxu1 %v3302_v26 }
 0x7e4   :  { %749 = vadd.xlane.f32.xlu0 %v748_v20 }
 0x86d   :  { %v750_v58 = vpop.xlane.xlu0 %749 }
 0x86e   :  { %v751_v61 = vmul.f32 0.00390625, %v750_v58 }
 0x870   :  { %v752_v62 = vadd.f32 1e-05, %v751_v61 }
 0x872   :  { %2758 = vrsqrt.f32 %v752_v62  ;;  %v2734_v62 = vld [vmem:[%s3820_s6 + $0x38] sm:$0xff]  }
 0x87f   :  { %v2759_v2 = vpop.eup %2758 }
 0x880   :  { %v755_v4 = vmul.f32 %v2759_v2, %v3653_v17  ;;  %v2721_v17 = vld [vmem:[#allocation35 + $0x30] sm:$0xff]  }
 0x882   :  { %v768_v7 = vmul.f32 %v764_v5, %v755_v4  ;;  %v2736_v4 = vld [vmem:[%s3820_s6 + $0x28] sm:$0xff]   ;;  %v2737_v5 = vld [vmem:[%s3820_s6 + $0x20] sm:$0xff]  }
 0x884   :  { %v781_v14 = vadd.f32 %v777_v8, %v768_v7  ;;  %v2739_v7 = vld [vmem:[%s3820_s6 + $0x10] sm:$0xff]   ;;  %v2740_v8 = vld [vmem:[%s3820_s6 + $0x8] sm:$0xff]  }
 0x886   :  { %v783_v20 = vmax.f32 %v781_v14, 0.0 }
 0x888   :  { %v1696_v27 = vpack.c.bf16 %v783_v20, %v783_v20 }
 0x89e   :  { %v1232_v29 = vpop.f32.mrf.mxu1 }
 0x89f   :  { %v1236_v31 = vmul.f32 %v1232_v29, %v3618_v40  ;;  %v2724_v29 = vld [vmem:[#allocation35 + $0x60] sm:$0xff]  }
 0x8a0   :  { %v2493_v32 = vpop.f32.mrf.mxu1 }
 0x8a1   :  { %2499 = vmatmul.mubr.msk.f32.vlgmr.msra.gmra.mxu1 %vm1038_vm2, %v1236_v31  ;;  %v2726_v31 = vld [vmem:[#allocation35 + $0x58] sm:$0xff]   ;;  %vm2172_vm2 = vcmask 64512  }
 0x8a2   :  { %2502 = vmatpush3.bf16.msra.mxu1 %v1324_v30  ;;  %2503 = vmatprep.mubr.msk.bf16.mxu1 %vm3303_vm0, %v3302_v26  ;;  %v2725_v30 = vld [vmem:[#allocation35 + $0x20] sm:$0xff]   ;;  %v2727_v32 = vld [vmem:[#allocation35 + $0x18] sm:$0xff]  }
 0x8a3   :  { %2527 = vmatprep.subr.bf16.mxu1 %v3302_v26 }
 0x8a5   :  { %2504 = vmatmul.mubr.msk.bf16.vlgmr.msra.gmra.mxu1 %vm1118_vm3, %v1315_v33  ;;  %v760_v33 = vrot.slane %v737_v3, %v3637_v59  ;;  %v2735_v3 = vld [vmem:[%s3820_s6 + $0x30] sm:$0xff]  }
 0x8a6   :  { %2543 = vmatprep.mubr.msk.bf16.mxu1 %vm3303_vm0, %v3302_v26  ;;  %2528 = vmatpush3.bf16.msra.mxu1 %v2734_v62 }
 0x8a7   :  { %2529 = vmatprep.subr.bf16.mxu1 %v3302_v26 }
 0x8aa   :  { %2530 = vmatpush3.bf16.msra.mxu1 %v2735_v3 }
 0x8ab   :  { %2531 = vmatprep.subr.bf16.mxu1 %v3302_v26 }
 0x8ae   :  { %2532 = vmatpush3.bf16.msra.mxu1 %v2736_v4 }
 0x8af   :  { %2533 = vmatprep.subr.bf16.mxu1 %v3302_v26 }
 0x8b2   :  { %2534 = vmatpush3.bf16.msra.mxu1 %v2737_v5 }
 0x8b3   :  { %2535 = vmatprep.subr.bf16.mxu1 %v3302_v26 }
 0x961   :  { %v3679_v34 = vpop.f32.mrf.mxu1 }
 0x962   :  { %vm1655_vm11 = vcmp.gt.f32.partialorder %v3679_v34, 0.5 }
 0x963   :  { %v2500_v35 = vpop.f32.mrf.mxu1 }
 0x964   :  { %v2728_v35 = vld [vmem:[#allocation35 + $0x50] sm:$0xff]  }
 0x965   :  { %v1360_v36 = vpop.f32.mrf.mxu1 }
 0x966   :  { %v1366_v38 = vadd.f32 %v1360_v36, %v3551_v22  ;;  %v2713_v22 = vld [vmem:[#allocation23 + $0x20] sm:$0xff]   ;;  %v754_v36 = vmul.f32 %v2759_v2, %v3651_v16 }
 0x967   :  { %v2505_v39 = vpop.f32.mrf.mxu1  ;;  %2514 = vmatpush3.bf16.msra.mxu0 %v2713_v22 }
 0x968   :  { %v1374_v40 = vadd.f32 %v2300_v37, %v1366_v38  ;;  %2515 = vmatprep.subr.bf16.mxu0 %v3302_v26  ;;  %v2729_v37 = vld [vmem:[#allocation35 + $0x10] sm:$0xff]   ;;  %v773_v38 = vrot.slane %v738_v6, %v3637_v59  ;;  %v2730_v39 = vld [vmem:[#allocation35 + $0x48] sm:$0xff]  }
 0x969   :  { %v1363_v41 = vpop.f32.mrf.mxu1  ;;  %v2303_v59 = vld [vmem:[#allocation24] ss:$0 sm:$0xff]  ;;  %v2738_v6 = vld [vmem:[%s3820_s6 + $0x18] sm:$0xff]  }
 0x96a   :  { %1377 = vadd.xlane.f32.xlu1 %v1374_v40  ;;  %v2731_v41 = vld [vmem:[#allocation35 + $0x8] sm:$0xff]   ;;  %2536 = vmatpush3.bf16.msra.mxu1 %v2738_v6 }
 0x96b   :  { %v2506_v42 = vpop.f32.mrf.mxu1  ;;  %2516 = vmatpush3.bf16.msra.mxu0 %v2714_v51  ;;  %2537 = vmatprep.subr.bf16.mxu1 %v3302_v26 }
 0x96c   :  { %2517 = vmatprep.subr.bf16.mxu0 %v3302_v26  ;;  %v2732_v42 = vld [vmem:[#allocation35 + $0x40] sm:$0xff]  }
 0x96e   :  { %2538 = vmatpush3.bf16.msra.mxu1 %v2739_v7 }
 0x96f   :  { %2518 = vmatpush3.bf16.msra.mxu0 %v2715_v54  ;;  %2539 = vmatprep.subr.bf16.mxu1 %v3302_v26 }
 0x970   :  { %2519 = vmatprep.subr.bf16.mxu0 %v3302_v26 }
 0x972   :  { %2540 = vmatpush3.bf16.msra.mxu1 %v2740_v8 }
 0x973   :  { %2520 = vmatpush3.bf16.msra.mxu0 %v2716_v55  ;;  %v2324_v55 = vld [vmem:[%s3819_s9] ss:$0 sm:$0xff]  ;;  %2541 = vmatprep.subr.bf16.mxu1 %v3302_v26 }
 0x974   :  { %2521 = vmatprep.subr.bf16.mxu0 %v3302_v26 }
 0x977   :  { %2522 = vmatpush3.bf16.msra.mxu0 %v2717_v56 }
 0x978   :  { %2406 = vmatprep.subr.bf16.mxu0 %v2718_v57 }
 0x9f3   :  { %v1378_v44 = vpop.xlane.xlu1 %1377 }
 0x9f4   :  { %v1379_v45 = vmul.f32 0.0078125, %v1378_v44  ;;  %v2733_v44 = vld [vmem:[#allocation35] sm:$0xff]  }
 0x9f6   :  { %v1380_v46 = vsub.f32 %v1374_v40, %v1379_v45  ;;  %v767_v40 = vmul.f32 %v760_v33, %v754_v36 }
 0x9f8   :  { %v1381_v47 = vmul.f32 %v1380_v46, %v1380_v46  ;;  %v780_v43 = vadd.f32 %v773_v38, %v767_v40  ;;  %v2747_v38 = vld [vmem:[%s3821_s15 + $0x10] sm:$0xff]  }
 0x9fa   :  { %1382 = vadd.xlane.f32.xlu1 %v1381_v47  ;;  %v782_v45 = vmax.f32 %v780_v43, 0.0 }
 0xa83   :  { %v1383_v63 = vpop.xlane.xlu1 %1382 }
 0xa84   :  { %v1384_v0 = vmul.f32 0.0078125, %v1383_v63 }
 0xa86   :  { %v1385_v1 = vadd.f32 1e-05, %v1384_v0 }
 0xa88   :  { %2760 = vrsqrt.f32 %v1385_v1 }
 0xa95   :  { %v2761_v9 = vpop.eup %2760 }
 0xa96   :  { %v1387_v11 = vmul.f32 %v2761_v9, %v1380_v46  ;;  %v1695_v46 = vpack.c.bf16 %v782_v45, %v782_v45 }
 0xa98   :  { %v1394_v18 = vmul.f32 %v2301_v10, %v1387_v11 }
 0xa9a   :  { %v1401_v19 = vadd.f32 %v2302_v13, %v1394_v18  ;;  %v2741_v13 = vld [vmem:[%s3820_s6] sm:$0xff]  }
 0xa9b   :  { %2542 = vmatpush3.bf16.msra.mxu1 %v2741_v13 }
 0xa9c   :  { %v1402_v21 = vmax.f32 %v1401_v19, 0.0  ;;  %2547 = vmatprep.subr.bf16.mxu1 %v3302_v26 }
 0xa9e   :  { %v1403_v24 = vpack.c.bf16 %v1402_v21, %v1402_v21 }
 0xaa0   :  { %2524 = vmatmul.mubr.bf16.vlgmr.msra.gmra.mxu0 %v1403_v24 }
 0xaa1   :  { %2407 = vmatpush3.bf16.msra.mxu0 %v2719_v23  ;;  %1864 = vmatprep.mubr.bf16.mxu0 %v1696_v27  ;;  %v2312_v23 = vld [vmem:[#allocation26] ss:$0 sm:$0xff] }
 0xaa2   :  { %2408 = vmatprep.subr.bf16.mxu0 %v2720_v25  ;;  %v2313_v25 = vld [vmem:[#allocation27] ss:$0 sm:$0xff] }
 0xaa5   :  { %2409 = vmatpush3.bf16.msra.mxu0 %v2721_v17 }
 0xaa6   :  { %2410 = vmatprep.subr.bf16.mxu0 %v2722_v28 }
 0xaa9   :  { %2411 = vmatpush3.bf16.msra.mxu0 %v2723_v60  ;;  %v2742_v60 = vld [vmem:[%s3821_s15 + $0x38] sm:$0xff]  }
 0xaaa   :  { %2412 = vmatprep.subr.bf16.mxu0 %v2724_v29 }
 0xaad   :  { %2413 = vmatpush3.bf16.msra.mxu0 %v2725_v30  ;;  %v2743_v30 = vld [vmem:[%s3821_s15 + $0x30] sm:$0xff]  }
 0xaae   :  { %2414 = vmatprep.subr.bf16.mxu0 %v2726_v31  ;;  %v2744_v31 = vld [vmem:[%s3821_s15 + $0x28] sm:$0xff]  }
 0xab1   :  { %2415 = vmatpush3.bf16.msra.mxu0 %v2727_v32 }
 0xab2   :  { %2416 = vmatprep.subr.bf16.mxu0 %v2728_v35  ;;  %v2745_v35 = vld [vmem:[%s3821_s15 + $0x20] sm:$0xff]  }
 0xab5   :  { %2417 = vmatpush3.bf16.msra.mxu0 %v2729_v37  ;;  %v2746_v37 = vld [vmem:[%s3821_s15 + $0x18] sm:$0xff]  }
 0xab6   :  { %2418 = vmatprep.subr.bf16.mxu0 %v2730_v39  ;;  %v2748_v39 = vld [vmem:[%s3821_s15 + $0x8] sm:$0xff]  }
 0xab9   :  { %2419 = vmatpush3.bf16.msra.mxu0 %v2731_v41  ;;  %v2749_v41 = vld [vmem:[%s3821_s15] sm:$0xff]  }
 0xaba   :  { %2420 = vmatprep.subr.bf16.mxu0 %v2732_v42  ;;  %v2341_v42 = vld [vmem:[%s3822_s16] ss:$0 sm:$0xff] }
 0xabd   :  { %2421 = vmatpush3.bf16.msra.mxu0 %v2733_v44  ;;  %v2342_v44 = vld [vmem:[%s3823_s18] ss:$0 sm:$0xff] }
 0xabe   :  { %2567 = vmatprep.subr.bf16.mxu0 %v3302_v26 }
 0xac0   :  { %1865 = vmatmul.mubr.bf16.vlgmr.msra.gmra.mxu0 %v1695_v46 }
 0xac1   :  { %2575 = vmatprep.mubr.msk.bf16.mxu0 %vm3303_vm0, %v3302_v26 }
 0xb60   :  { %v1509_v16 = vpop.f32.mrf.mxu0 }
 0xb61   :  { %v1510_v47 = vadd.f32 %v2303_v59, %v1509_v16 }
 0xb62   :  { %v2525_v49 = vpop.f32.mrf.mxu0 }
 0xb63   :  { %1517 = vadd.xlane.f32.xlu1 %v1510_v47 }
 0xb64   :  { %v1512_v50 = vpop.f32.mrf.mxu0 }
 0xb66   :  { %v2526_v22 = vpop.f32.mrf.mxu0 }
 0xb80   :  { %v2422_v51 = vpop.f32.mrf.mxu0 }
 0xb82   :  { %v2423_v54 = vpop.f32.mrf.mxu0 }
 0xb83   :  { %v2424_v56 = vadd.f32 %v2423_v54, %v2422_v51  ;;  %v2314_v51 = vld [vmem:[#allocation29] ss:$0 sm:$0xff]  ;;  %v2343_v54 = vld [vmem:[%s3824_s22] ss:$0 sm:$0xff] }
 0xb84   :  { %v2425_v57 = vpop.f32.mrf.mxu0 }
 0xb85   :  { %v1867_v58 = vadd.f32 %v2424_v56, %v2324_v55 }
 0xb86   :  { %v2426_v61 = vpop.f32.mrf.mxu0 }
 0xb87   :  { %1874 = vadd.xlane.f32.xlu0 %v1867_v58 }
 0xbec   :  { %v1518_v63 = vpop.xlane.xlu1 %1517 }
 0xbed   :  { %v1519_v0 = vmul.f32 0.0078125, %v1518_v63 }
 0xbef   :  { %v1520_v1 = vsub.f32 %v1510_v47, %v1519_v0 }
 0xbf1   :  { %v1521_v2 = vmul.f32 %v1520_v1, %v1520_v1 }
 0xbf3   :  { %1522 = vadd.xlane.f32.xlu1 %v1521_v2  ;;  %v1144_v2 = vsub.f32 %v3625_v48, %v3631_v53 }
 0xbf5   :  { %v1145_v3 = vmul.f32 1.442695, %v1144_v2 }
 0xc10   :  { %v1875_v9 = vpop.xlane.xlu0 %1874 }
 0xc11   :  { %v1876_v10 = vmul.f32 0.0078125, %v1875_v9 }
 0xc13   :  { %v1877_v11 = vsub.f32 %v1867_v58, %v1876_v10 }
 0xc15   :  { %v1878_v14 = vmul.f32 %v1877_v11, %v1877_v11 }
 0xc17   :  { %1879 = vadd.xlane.f32.xlu0 %v1878_v14 }
 0xc7c   :  { %v1523_v18 = vpop.xlane.xlu1 %1522 }
 0xc7d   :  { %v1524_v19 = vmul.f32 0.0078125, %v1523_v18 }
 0xc7f   :  { %v1525_v20 = vadd.f32 1e-05, %v1524_v19  ;;  %v1153_v19 = vmul.f32 %v3649_v15, %v3625_v48 }
 0xc81   :  { %2762 = vrsqrt.f32 %v1525_v20  ;;  %v1154_v20 = vsel %vm1118_vm3, %v1153_v19, 0.0 }
 0xc8e   :  { %v2763_v21 = vpop.eup %2762 }
 0xc8f   :  { %v1527_v24 = vmul.f32 %v2763_v21, %v1520_v1  ;;  %v2750_v21 = vld [vmem:[%s3495_s25 + $0x18] sm:$0xff]  }
 0xc90   :  { %2568 = vmatpush3.bf16.msra.mxu0 %v2750_v21 }
 0xc91   :  { %v1534_v27 = vmul.f32 %v2312_v23, %v1527_v24  ;;  %2569 = vmatprep.subr.bf16.mxu0 %v3302_v26  ;;  %v2751_v23 = vld [vmem:[%s3495_s25 + $0x10] sm:$0xff]   ;;  %v2752_v24 = vld [vmem:[%s3495_s25 + $0x8] sm:$0xff]  }
 0xc93   :  { %v1541_v17 = vadd.f32 %v2313_v25, %v1534_v27  ;;  %v2753_v25 = vld [vmem:[%s3495_s25] sm:$0xff]   ;;  %s3305_s25 = smov 1  }
 0xc94   :  { %2570 = vmatpush3.bf16.msra.mxu0 %v2751_v23 }
 0xc95   :  { %v1542_v28 = vmax.f32 %v1541_v17, 0.0  ;;  %2571 = vmatprep.subr.bf16.mxu0 %v3302_v26 }
 0xc97   :  { %v1543_v29 = vpack.c.bf16 %v1542_v28, %v1542_v28 }
 0xc98   :  { %2572 = vmatpush3.bf16.msra.mxu0 %v2752_v24 }
 0xc99   :  { %2544 = vmatmul.mubr.bf16.vlgmr.msra.gmra.mxu1 %v1543_v29  ;;  %2573 = vmatprep.subr.bf16.mxu0 %v3302_v26 }
 0xc9a   :  { %2548 = vmatpush3.bf16.msra.mxu1 %v2742_v60  ;;  %2563 = vmatprep.mubr.msk.bf16.mxu1 %vm3303_vm0, %v3302_v26  ;;  %vm2135_vm0 = vcmask 7168  }
 0xc9b   :  { %2549 = vmatprep.subr.bf16.mxu1 %v3302_v26 }
 0xc9c   :  { %2574 = vmatpush3.bf16.msra.mxu0 %v2753_v25 }
 0xc9e   :  { %2550 = vmatpush3.bf16.msra.mxu1 %v2743_v30 }
 0xc9f   :  { %2551 = vmatprep.subr.bf16.mxu1 %v3302_v26 }
 0xca0   :  { %v1880_v32 = vpop.xlane.xlu0 %1879 }
 0xca1   :  { %v1881_v33 = vmul.f32 0.0078125, %v1880_v32 }
 0xca2   :  { %2552 = vmatpush3.bf16.msra.mxu1 %v2744_v31 }
 0xca3   :  { %v1882_v36 = vadd.f32 1e-05, %v1881_v33  ;;  %2553 = vmatprep.subr.bf16.mxu1 %v3302_v26 }
 0xca5   :  { %2764 = vrsqrt.f32 %v1882_v36  ;;  %v2352_v36 = vld [vmem:[%s3825_s24] ss:$0 sm:$0xff] }
 0xca6   :  { %2554 = vmatpush3.bf16.msra.mxu1 %v2745_v35  ;;  %2766 = vpow2.f32 %v1145_v3 }
 0xca7   :  { %2555 = vmatprep.subr.bf16.mxu1 %v3302_v26 }
 0xcaa   :  { %2556 = vmatpush3.bf16.msra.mxu1 %v2746_v37 }
 0xcab   :  { %2557 = vmatprep.subr.bf16.mxu1 %v3302_v26 }
 0xcae   :  { %2558 = vmatpush3.bf16.msra.mxu1 %v2747_v38  ;;  %v2353_v38 = vld [vmem:[%s3490_s20] ss:$0 sm:$0xff]  ;;  %s3306_s20 = smov [#allocation36]  }
 0xcaf   :  { %2559 = vmatprep.subr.bf16.mxu1 %v3302_v26  ;;  %s2180_s0 = sshll.u32 %s3306_s20, 4  ;;  %s2181_s0 = int_to_ptr.vmem [resolvable:$true] %s2180_s0 }
 0xcb0   :  { %s3196_s14 = scalar_lea.vmem %s2181_s0, 128  ;;  %p3201_p8 = scmp.lt.s32.totalorder %s2181_s0, %s2181_s0 }
 0xcb1   :  { %p3197_p7 = scmp.ne.s32.totalorder %s2181_s0, %s3196_s14  ;;  %p3202_p9 = scmp.lt.s32.totalorder %s3196_s14, %s3196_s14 }
 0xcb2   :  { %v2765_v40 = vpop.eup %2764  ;;  %2560 = vmatpush3.bf16.msra.mxu1 %v2748_v39 }
 0xcb3   :  { %2561 = vmatprep.subr.bf16.mxu1 %v3302_v26  ;;  %v1884_v43 = vmul.f32 %v2765_v40, %v1877_v11  ;;  %v2767_v14 = vpop.eup %2766  ;;  %p3203_p10 = por %p3202_p9, %p3201_p8 }
 0xcb4   :  { %v1147_v18 = vsel %vm1118_vm3, %v2767_v14, 0.0 }
 0xcb5   :  { %v1891_v45 = vmul.f32 %v2341_v42, %v1884_v43  ;;  %p3204_p11 = pnand %p3203_p10, %p3197_p7 }
 0xcb6   :  { %2562 = vmatpush3.bf16.msra.mxu1 %v2749_v41 }
 0xcb7   :  { %v1898_v46 = vadd.f32 %v2342_v44, %v1891_v45 }
 0xcb9   :  { %v1899_v59 = vmax.f32 %v1898_v46, 0.0 }
 0xcbb   :  { %v1900_v16 = vpack.c.bf16 %v1899_v59, %v1899_v59  ;;  %v2127_v59 = vmul.u32 2, %v3644_v12 }
 0xcbd   :  { %2564 = vmatmul.mubr.bf16.vlgmr.msra.gmra.mxu1 %v1900_v16 }
 0xd59   :  { %v1649_v47 = vpop.f32.mrf.mxu1 }
 0xd5a   :  { %v1650_v55 = vadd.f32 %v2314_v51, %v1649_v47  ;;  %v2354_v51 = vld [vmem:[#allocation2] ss:$0 sm:$0xff] }
 0xd5b   :  { %v2545_v49 = vpop.f32.mrf.mxu1 }
 0xd5c   :  { %v3737_v62 = vsel %vm1655_vm11, %v1650_v55, -1e+30 }
 0xd5d   :  { %v1652_v50 = vpop.f32.mrf.mxu1  ;;  %v1658_v1 = vsel %vm1657_vm12, %v3737_v62, -inf }
 0xd5f   :  { %v2546_v22 = vpop.f32.mrf.mxu1 }
 0xd7d   :  { %v2006_v56 = vpop.f32.mrf.mxu1 }
 0xd7e   :  { %v2007_v57 = vadd.f32 %v2343_v54, %v2006_v56 }
 0xd7f   :  { %v2565_v58 = vpop.f32.mrf.mxu1 }
 0xd80   :  { %v2015_v61 = vsel %vm2014_vm10, %v2007_v57, 0.0 }
 0xd81   :  { %2016 = vadd.xlane.f32.xlu1 %v2015_v61  ;;  %v2009_v63 = vpop.f32.mrf.mxu1 }
 0xd83   :  { %v2566_v0 = vpop.f32.mrf.mxu1 }
 0xd85   :  { %1659 = vmax.xlane.f32.xlu1 %v1658_v1 }
 0xe0a   :  { %v2017_v4 = vpop.xlane.xlu1 %2016 }
 0xe0b   :  { %v2019_v5 = vmul.f32 0.015625, %v2017_v4 }
 0xe0d   :  { %v2020_v34 = vsub.f32 %v2007_v57, %v2019_v5 }
 0xe0e   :  { %v3743_v6 = vpop.xlane.xlu1 %1659 }
 0xe0f   :  { %vm1661_vm13 = vcmp.eq.f32.partialorder %v3737_v62, %v3743_v6  ;;  %v2021_v7 = vmul.f32 %v2020_v34, %v2020_v34  ;;  %v1681_v48 = vsub.f32 %v3737_v62, %v3743_v6 }
 0xe10   :  { %v1662_v8 = vsel %vm1661_vm13, %v3629_v52, 2 }
 0xe11   :  { %v2022_v9 = vsel %vm2014_vm10, %v2021_v7, 0.0  ;;  %v1663_v10 = vsel %vm1657_vm12, %v1662_v8, 2147483647  ;;  %v1682_v15 = vmul.f32 1.442695, %v1681_v48 }
 0xe12   :  { %2023 = vadd.xlane.f32.xlu0 %v2022_v9  ;;  %v1665_v11 = vshra.s32 %v1663_v10, 16  ;;  %v1664_v17 = vand.u32 65535, %v1663_v10 }
 0xe13   :  { %2768 = vpow2.f32 %v1682_v15 }
 0xe14   :  { %v1667_v13 = vcvt.s32.f32 %v1665_v11  ;;  %v1666_v30 = vcvt.s32.f32 %v1664_v17 }
 0xe16   :  { %1668 = vmin.xlane.f32.xlu0 %v1667_v13 }
 0xe1a   :  { %1148 = vadd.xlane.f32.xlu0 %v1147_v18 }
 0xe1e   :  { %1155 = vadd.xlane.f32.xlu0 %v1154_v20 }
 0xe20   :  { %v2769_v32 = vpop.eup %2768 }
 0xe21   :  { %v1684_v33 = vsel %vm1657_vm12, %v2769_v32, 0.0 }
 0xe9b   :  { %v2024_v27 = vpop.xlane.xlu0 %2023 }
 0xe9c   :  { %v2025_v28 = vmul.f32 0.015625, %v2024_v27 }
 0xe9e   :  { %v2026_v60 = vadd.f32 1e-05, %v2025_v28 }
 0xe9f   :  { %v1669_v29 = vpop.xlane.xlu0 %1668 }
 0xea0   :  { %2770 = vrsqrt.f32 %v2026_v60  ;;  %vm1670_vm14 = vcmp.eq.f32.partialorder %v1667_v13, %v1669_v29  ;;  %v1675_v43 = vcvt.f32.s32 %v1669_v29 }
 0xea1   :  { %v1671_v31 = vsel %vm1670_vm14, %v1666_v30, inf }
 0xea2   :  { %1672 = vmin.xlane.f32.xlu1 %v1671_v31  ;;  %v1676_v45 = vshll.u32 %v1675_v43, 16 }
 0xea3   :  { %v1149_v12 = vpop.xlane.xlu0 %1148 }
 0xea4   :  { %2772 = vlog2.f32 %v1149_v12 }
 0xea6   :  { %1685 = vadd.xlane.f32.xlu1 %v1684_v33 }
 0xea7   :  { %v1156_v3 = vpop.xlane.xlu0 %1155 }
 0xead   :  { %v2771_v35 = vpop.eup %2770 }
 0xeae   :  { %v2028_v37 = vmul.f32 %v2771_v35, %v2020_v34 }
 0xeb0   :  { %v2035_v39 = vmul.f32 %v2352_v36, %v2028_v37 }
 0xeb2   :  { %v2042_v40 = vadd.f32 %v2353_v38, %v2035_v39 }
 0xeb4   :  { %v2043_v41 = vmax.f32 %v2042_v40, 0.0 }
 0xeb6   :  { %v2044_v42 = vpack.c.bf16 %v2043_v41, %v2043_v41 }
 0xeb8   :  { %2576 = vmatmul.mubr.msk.bf16.vlgmr.msra.gmra.mxu0 %vm2014_vm10, %v2044_v42 }
 0xf2b   :  { %v1673_v44 = vpop.xlane.xlu1 %1672 }
 0xf2c   :  { %v1674_v46 = vcvt.f32.s32 %v1673_v44 }
 0xf2e   :  { %v1677_v16 = vadd.s32 %v1676_v45, %v1674_v46 }
 0xf2f   :  { %v1686_v61 = vpop.xlane.xlu1 %1685 }
 0xf30   :  { %v2128_v47 = vadd.s32 %v2127_v59, %v1677_v16  ;;  %vm1678_vm15 = vcmp.eq.s32.totalorder %v3629_v52, %v1677_v16  ;;  %2774 = vlog2.f32 %v1686_v61  ;;  %v2773_v52 = vpop.eup %2772 }
 0xf31   :  { %v2323_v49 = vsel %vm1678_vm15, 1.0, %v3302_v26  ;;  %v1151_v26 = vmul.f32 0.6931472, %v2773_v52 }
 0xf32   :  { %v1690_v50 = vmul.f32 %v2323_v49, %v3737_v62  ;;  %v2129_v34 = vcvt.s32.f32 %v2128_v47 }
 0xf33   :  { %v1152_v1 = vadd.f32 %v1151_v26, %v3631_v53 }
 0xf34   :  { %v1691_v22 = vsel %vm1657_vm12, %v1690_v50, 0.0 }
 0xf35   :  { %1692 = vadd.xlane.f32.xlu1 %v1691_v22  ;;  %v1157_v5 = vsub.f32 %v1156_v3, %v1152_v1 }
 0xf3d   :  { %v2775_v63 = vpop.eup %2774 }
 0xf3e   :  { %v1688_v0 = vmul.f32 0.6931472, %v2775_v63 }
 0xf40   :  { %v1689_v2 = vadd.f32 %v1688_v0, %v3743_v6 }
 0xf78   :  { %v2121_v54 = vpop.f32.mrf.mxu0 }
 0xf79   :  { %v2122_v55 = vadd.f32 %v2354_v51, %v2121_v54 }
 0xf7a   :  { %v2577_v56 = vpop.f32.mrf.mxu0 }
 0xf7b   :  { %2132 = vrot.lane.b32.xlu0 %v2122_v55, %s3305_s25 }
 0xf7c   :  { %v2124_v57 = vpop.f32.mrf.mxu0 }
 0xf7e   :  { %v2578_v58 = vpop.f32.mrf.mxu0 }
 0xfbe   :  { %v1693_v62 = vpop.xlane.xlu1 %1692 }
 0xfbf   :  { %v1694_v4 = vsub.f32 %v1693_v62, %v1689_v2 }
 0xfc1   :  { %v2130_v7 = vadd.f32 %v1694_v4, %v1157_v5 }
 0xfed   :  { %v2133_v8 = vpop.permute.xlu0 %2132 }
 0xfee   :  { %v2136_v9 = vsel %vm2135_vm0, %v2129_v34, %v2133_v8 }
 0xfef   :  { %v2137_v10 = vsel %vm1657_vm12, %v2136_v9, %v2130_v7 }
 0xff0   :  { %v2139_v11 = vsel %vm2138_vm1, %v2137_v10, 0.0 }
 0xff1   :  { %2140 = vxpose.xlu1.b32.start.end [1/1] (short) (narrow) %v2139_v11, 8 }
0x106d   :  { %v2156_v53 = vpop.trf.xlu1 }
0x106e   :  { %2173 = vst.msk [vmem:[#allocation36] sm:$0xff] %vm2172_vm2, %v2156_v53 }
0x106f   :  { %3207 = shalt.err (!%p3204_p11)
}
0x1070   :  { %2183 = dma.vmem_to_hbm [thread:$0]  %s2181_s0, 128, %s3503_s17, [#allocation5]  }
0x1071   :  { %3238 = dma.done.wait [#allocation5], 128  }
0x1072   :  { %3239 = vsyncadd [#allocation5], 4294967168 }
0x1073   :  { %2187 = vsyncpa [#allocation4], 1 }
0x1074   :  { %2188 = vsyncpa [#allocation7], 1 }
0x1075   :  { %2189 = vsyncpa [#allocation10], 1 }
0x1076   :  { %2190 = vsyncpa [#allocation13], 1 }
0x1077   :  { %2191 = vsyncpa [#allocation16], 1 }
0x1078   :  { %2192 = vsyncpa [#allocation19], 1 }
0x1079   :  { %2193 = vsyncpa [#allocation22], 1 }
0x107a   :  { %2194 = vsyncpa [#allocation25], 1 }
0x107b   :  { %2195 = vsyncpa [#allocation28], 1 }
0x107c   :  { %2196 = vsyncpa [#allocation31], 1 }
0x107d   :  { %2197 = vsyncpa [#allocation34], 1 }
0x107e   :  { %2198 = vsyncpa [#allocation5], 1 }

</bundles_post_ra>
